<compile_context>
chip_gen: v7x
topology: tpu7x:2x2x1
jax: 0.10.0
libtpu: 0.0.40
codegen_flags: <defaults>
</compile_context>

<pallas_src>
import math

import jax
import jax.numpy as jnp
from jax import lax
from jax.experimental import pallas as pl
from jax.experimental.pallas import tpu as pltpu


# --------------------------------------------------------------------------- #
# Fixed sinusoidal table (identical to the PyTorch __init__)
# --------------------------------------------------------------------------- #
def _build_fixed_table(c_in: int, d_model: int) -> jnp.ndarray:
    assert d_model % 2 == 0, "d_model must be even (same constraint as PyTorch)"
    position = jnp.arange(0, c_in, dtype=jnp.float32)[:, None]                # (c_in, 1)
    div_term = jnp.exp(
        jnp.arange(0, d_model, 2, dtype=jnp.float32)
        * -(math.log(10000.0) / d_model)
    )                                                                          # (d_model//2,)
    w = jnp.zeros((c_in, d_model), dtype=jnp.float32)
    w = w.at[:, 0::2].set(jnp.sin(position * div_term))
    w = w.at[:, 1::2].set(jnp.cos(position * div_term))
    return w


def _round_up(x: int, m: int) -> int:
    return ((x + m - 1) // m) * m


def _num_tensorcores() -> int:
    """2 only on megacore parts (v7x / v5p / v4); 1 on v5e / v6e."""
    try:
        kind = (getattr(jax.devices()[0], "device_kind", "") or "").lower()
        if any(tag in kind for tag in ("v7", "v5p", "v4")):
            return 2
    except Exception:
        pass
    return 1


def _vmem_capacity_bytes() -> int:
    try:
        return int(pltpu.get_tpu_info().vmem_capacity_bytes)
    except Exception:
        return 64 * 1024 * 1024          # conservative fallback (v7x per-TC VMEM)


# --------------------------------------------------------------------------- #
# Kernel
# --------------------------------------------------------------------------- #
def _embed_kernel(idx_ref, tab_ref, out_ref):
    # idx_ref: (k, tile_m, 1) int32   -- k packed lookups per output row
    # tab_ref: (k*c_pad, d_out) f32   -- block-diagonal (k>1) or padded table
    # out_ref: (tile_m, d_out) f32
    k = idx_ref.shape[0]
    c_pad = tab_ref.shape[0] // k

    # Loop-invariant small iota; broadcast happens inside the comparison.
    col = lax.broadcasted_iota(jnp.int32, (1, c_pad), 1)                       # (1, c_pad)

    pieces = []
    for j in range(k):                                                          # static unroll
        ids_j = idx_ref[j]                                                      # (tile_m, 1)
        pieces.append((ids_j == col).astype(jnp.float32))                       # (tile_m, c_pad)
    onehot = pieces[0] if k == 1 else jnp.concatenate(pieces, axis=1)           # (tile_m, k*c_pad)

    out_ref[...] = jnp.dot(
        onehot, tab_ref[...],
        preferred_element_type=jnp.float32,
        precision=lax.Precision.HIGHEST,          # keep the f32 table values exact on the MXU
    )


# --------------------------------------------------------------------------- #
# Wrapper
# --------------------------------------------------------------------------- #
def cat_fixed_embedding(x: jnp.ndarray, table: jnp.ndarray,
                        tile_n: int | None = None) -> jnp.ndarray:
    """x: integer indices, any shape. Returns x.shape + (d_model,) float32."""
    c_in, d_model = table.shape
    orig_shape = x.shape
    idx = x.reshape(-1).astype(jnp.int32)                                       # (N,)
    n = int(idx.shape[0])

    # ---- lane packing factor ---------------------------------------------
    # Pack k lookups per 128-lane output row when d_model divides 128 and the
    # unroll stays small; otherwise fall back to plain lane padding.
    if d_model < 128 and 128 % d_model == 0 and (128 // d_model) <= 8:
        k = 128 // d_model
        d_out = 128
    else:
        k = 1
        d_out = max(128, _round_up(d_model, 128))

    # K dim (vocab) -> multiple of 128 for aligned systolic passes; padded rows
    # are all-zero and never selected for valid indices, so results are exact.
    c_pad = max(128, _round_up(c_in, 128))

    # Block-diagonal (k > 1) or zero-padded (k == 1) table, float32.
    tab = jnp.zeros((k * c_pad, d_out), dtype=jnp.float32)
    for j in range(k):
        tab = tab.at[j * c_pad:j * c_pad + c_in,
                     j * d_model:(j + 1) * d_model].set(table.astype(jnp.float32))

    rows = max(1, -(-n // k))                                                   # packed rows needed

    # ---- tile size derived from a VMEM budget ------------------------------
    vmem_cap = _vmem_capacity_bytes()
    vmem_budget = int(0.4 * vmem_cap)        # leave room for compiler scratch / double buffers

    def footprint(tm: int) -> int:
        return 4 * (2 * (k * c_pad) * d_out          # table block (double-buffered, constant map)
                    + 2 * tm * d_out                 # output block
                    + 2 * k * tm * 128               # index block (lane-padded int32)
                    + tm * (k * c_pad))              # one-hot temporary

    if tile_n is None:
        tile_n = 2048                                 # original (unpacked) rows per grid step
    tile_m = max(8, _round_up(max(1, tile_n // k), 8))
    tile_m = min(tile_m, _round_up(rows, 8))          # don't over-pad tiny inputs
    while tile_m > 8 and footprint(tile_m) > vmem_budget:
        tile_m = max(8, _round_up(tile_m // 2, 8))
    # Only split small inputs into >= 2 grid steps when megacore sharding exists.
    if _num_tensorcores() >= 2:
        while tile_m > 8 and rows > 8 and pl.cdiv(rows, tile_m) < 2:
            tile_m = max(8, _round_up(tile_m // 2, 8))

    rows_pad = _round_up(rows, tile_m)
    n_need = rows_pad * k
    if n_need != n:
        idx = jnp.pad(idx, (0, n_need - n))           # pad value 0 is a valid index
    # (k, rows_pad, 1): lets the kernel pull each packed slot with idx_ref[j].
    idx3d = jnp.transpose(idx.reshape(rows_pad, k), (1, 0))[:, :, None]

    grid = (rows_pad // tile_m,)

    vmem_bytes = footprint(tile_m) + (2 << 20)                                  # + headroom
    vmem_limit = int(min(int(0.8 * vmem_cap), max(vmem_bytes, 32 * 1024 * 1024)))

    cost = pl.CostEstimate(
        flops=2 * rows_pad * (k * c_pad) * d_out,
        transcendentals=0,
        bytes_accessed=4 * (rows_pad * k + k * c_pad * d_out + rows_pad * d_out),
    )

    out = pl.pallas_call(
        _embed_kernel,
        out_shape=jax.ShapeDtypeStruct((rows_pad, d_out), jnp.float32),
        grid_spec=pltpu.PrefetchScalarGridSpec(
            num_scalar_prefetch=0,
            grid=grid,
            in_specs=[
                pl.BlockSpec((k, tile_m, 1), lambda i: (0, i, 0)),              # index tile
                pl.BlockSpec((k * c_pad, d_out), lambda i: (0, 0)),             # resident table
            ],
            out_specs=pl.BlockSpec((tile_m, d_out), lambda i: (i, 0)),          # lane-dense output
        ),
        compiler_params=pltpu.CompilerParams(
            dimension_semantics=("parallel",),
            vmem_limit_bytes=vmem_limit),
        cost_estimate=cost,
    )(idx3d, tab)

    # Unpack lanes (k packed lookups per row) and strip padding in the wrapper.
    out = out[:, :k * d_model].reshape(rows_pad * k, d_model)
    out = out[:n]
    return out.reshape(*orig_shape, d_model)


# --------------------------------------------------------------------------- #
# Self-test
# --------------------------------------------------------------------------- #
if __name__ == "__main__":
    c_in, d_model = 16, 32
    B, L = 2, 8

    table = _build_fixed_table(c_in, d_model)

    key = jax.random.PRNGKey(0)
    x = jax.random.randint(key, (B, L), minval=0, maxval=c_in, dtype=jnp.int32)

    out = cat_fixed_embedding(x, table)
    out = jax.block_until_ready(out)

    # Reference: plain JAX gather.
    ref = jnp.take(table, x, axis=0)
    assert out.shape == (B, L, d_model), out.shape
    assert out.dtype == jnp.float32
    assert bool(jnp.allclose(out, ref, rtol=1e-6, atol=1e-6)), "mismatch vs reference gather"

    print("KERNEL_OK")
</pallas_src>

<mosaic_0001>
module attributes {stable_mosaic.version = 11 : i64} {
  func.func @_embed_kernel(%arg0: i32, %arg1: memref<4x8x1xi32, #tpu.memory_space<vmem>>, %arg2: memref<512x128xf32, #tpu.memory_space<vmem>>, %arg3: memref<8x128xf32, #tpu.memory_space<vmem>>) attributes {dimension_semantics = [#tpu.dimension_semantics<parallel>], iteration_bounds = array<i64: 1>, scalar_prefetch = 0 : i64, scratch_operands = 0 : i64, tpu.core_type = #tpu.core_type<tc>, window_params = [{transform_indices = @transform_0, window_bounds = array<i64: 4, 8, 1>}, {pipeline_mode = #tpu.pipeline_mode<synchronous>, transform_indices = @transform_1, window_bounds = array<i64: 512, 128>}, {transform_indices = @transform_2, window_bounds = array<i64: 8, 128>}]} {
    %0 = tpu.iota {dimensions = array<i32: 1>} : vector<1x128xi32>
    %c0 = arith.constant 0 : index
    %c0_0 = arith.constant 0 : index
    %c0_1 = arith.constant 0 : index
    %1 = vector.load %arg1[%c0, %c0_0, %c0_1] : memref<4x8x1xi32, #tpu.memory_space<vmem>>, vector<1x8x1xi32>
    %2 = vector.shape_cast %1 : vector<1x8x1xi32> to vector<8x1xi32>
    %3 = vector.broadcast %2 : vector<8x1xi32> to vector<8x128xi32>
    %4 = vector.broadcast %0 : vector<1x128xi32> to vector<8x128xi32>
    %5 = arith.cmpi eq, %3, %4 : vector<8x128xi32>
    %6 = arith.extui %5 : vector<8x128xi1> to vector<8x128xi32>
    %7 = arith.sitofp %6 : vector<8x128xi32> to vector<8x128xf32>
    %c1 = arith.constant 1 : index
    %c0_2 = arith.constant 0 : index
    %c0_3 = arith.constant 0 : index
    %8 = vector.load %arg1[%c1, %c0_2, %c0_3] : memref<4x8x1xi32, #tpu.memory_space<vmem>>, vector<1x8x1xi32>
    %9 = vector.shape_cast %8 : vector<1x8x1xi32> to vector<8x1xi32>
    %10 = vector.broadcast %9 : vector<8x1xi32> to vector<8x128xi32>
    %11 = vector.broadcast %0 : vector<1x128xi32> to vector<8x128xi32>
    %12 = arith.cmpi eq, %10, %11 : vector<8x128xi32>
    %13 = arith.extui %12 : vector<8x128xi1> to vector<8x128xi32>
    %14 = arith.sitofp %13 : vector<8x128xi32> to vector<8x128xf32>
    %c2 = arith.constant 2 : index
    %c0_4 = arith.constant 0 : index
    %c0_5 = arith.constant 0 : index
    %15 = vector.load %arg1[%c2, %c0_4, %c0_5] : memref<4x8x1xi32, #tpu.memory_space<vmem>>, vector<1x8x1xi32>
    %16 = vector.shape_cast %15 : vector<1x8x1xi32> to vector<8x1xi32>
    %17 = vector.broadcast %16 : vector<8x1xi32> to vector<8x128xi32>
    %18 = vector.broadcast %0 : vector<1x128xi32> to vector<8x128xi32>
    %19 = arith.cmpi eq, %17, %18 : vector<8x128xi32>
    %20 = arith.extui %19 : vector<8x128xi1> to vector<8x128xi32>
    %21 = arith.sitofp %20 : vector<8x128xi32> to vector<8x128xf32>
    %c3 = arith.constant 3 : index
    %c0_6 = arith.constant 0 : index
    %c0_7 = arith.constant 0 : index
    %22 = vector.load %arg1[%c3, %c0_6, %c0_7] : memref<4x8x1xi32, #tpu.memory_space<vmem>>, vector<1x8x1xi32>
    %23 = vector.shape_cast %22 : vector<1x8x1xi32> to vector<8x1xi32>
    %24 = vector.broadcast %23 : vector<8x1xi32> to vector<8x128xi32>
    %25 = vector.broadcast %0 : vector<1x128xi32> to vector<8x128xi32>
    %26 = arith.cmpi eq, %24, %25 : vector<8x128xi32>
    %27 = arith.extui %26 : vector<8x128xi1> to vector<8x128xi32>
    %28 = arith.sitofp %27 : vector<8x128xi32> to vector<8x128xf32>
    %29 = tpu.concatenate %7, %14, %21, %28 in 1 : vector<8x128xf32>, vector<8x128xf32>, vector<8x128xf32>, vector<8x128xf32> -> vector<8x512xf32>
    %c0_8 = arith.constant 0 : index
    %c0_9 = arith.constant 0 : index
    %30 = vector.load %arg2[%c0_8, %c0_9] : memref<512x128xf32, #tpu.memory_space<vmem>>, vector<512x128xf32>
    %cst = arith.constant dense<0.000000e+00> : vector<8x128xf32>
    %31 = tpu.matmul %29, %30, %cst {dimension_numbers = #tpu.dot_dimension_numbers<[1], [0], [0], [1], [0, 0, 1, 1], [], []>, precision = #tpu.contract_precision<fp32>} : vector<8x512xf32>, vector<512x128xf32>, vector<8x128xf32> -> vector<8x128xf32>
    %c0_10 = arith.constant 0 : index
    %c0_11 = arith.constant 0 : index
    %32 = vector.load %arg3[%c0_10, %c0_11] : memref<8x128xf32, #tpu.memory_space<vmem>>, vector<8x128xf32>
    tpu.vector_store %arg3[%c0_10, %c0_11], %31 {strides = array<i32>} : memref<8x128xf32, #tpu.memory_space<vmem>>, vector<8x128xf32>,
    return
  }
  func.func @transform_0(%arg0: i32) -> (i32, i32, i32) {
    %c0_i32 = arith.constant 0 : i32
    %c0_i32_0 = arith.constant 0 : i32
    %c0_i32_1 = arith.constant 0 : i32
    return %c0_i32, %arg0, %c0_i32_0 : i32, i32, i32
  }
  func.func @transform_1(%arg0: i32) -> (i32, i32) {
    %c0_i32 = arith.constant 0 : i32
    %c0_i32_0 = arith.constant 0 : i32
    %c0_i32_1 = arith.constant 0 : i32
    return %c0_i32, %c0_i32_0 : i32, i32
  }
  func.func @transform_2(%arg0: i32) -> (i32, i32) {
    %c0_i32 = arith.constant 0 : i32
    %c0_i32_0 = arith.constant 0 : i32
    return %arg0, %c0_i32 : i32, i32
  }
}

</mosaic_0001>

<bundles_post_ra>
// kernel: tpu_custom_call.1
= control target key start
LH: loop header
LB: loop body
LE: loop exit
PB: predicated region body
PF: predicated region fallthrough
CT: control target
= control target key end

     0   :  { %7 = vsyncpa [#allocation3], 0  ;;  %s4188_s0 = inlined_call_operand.vmem [shape: s32[4,8,1], index: 0, kind: input, shape index: {}]   ;;  %s4189_s1 = inlined_call_operand.hbm [shape: f32[512,128], index: 1, kind: input, shape index: {}]   ;;  %s4190_s2 = inlined_call_operand.hbm [shape: f32[8,128], index: 2, kind: output, shape index: {}]  }
   0x1   :  { %8 = vsyncpa [#allocation4], 0  ;;  %s2743_s9 = smov [#allocation2]   ;;  %s2695_s13 = scalar_lea.hbm %s4189_s1, 8192 }
   0x2   :  { %s16_s10 = sshll.u32 %s2743_s9, 4  ;;  %p2696_p0 = scmp.ne.s32.totalorder %s4189_s1, %s2695_s13  ;;  %s17_s10 = int_to_ptr.vmem [resolvable:$true] %s16_s10 }
   0x3   :  { %p2699_p1 = scmp.lt.u32.totalorder %s2695_s13, %s4189_s1 }
   0x5   :  { %p2701_p2 = pnand %p2699_p1, %p2696_p0 }
   0x7   :  { %2704 = shalt.err (!%p2701_p2)
}
   0x8   :  { %s2705_s18 = scalar_lea.vmem %s17_s10, 8192  ;;  %p2710_p4 = scmp.lt.s32.totalorder %s17_s10, %s17_s10 }
   0x9   :  { %p2706_p3 = scmp.ne.s32.totalorder %s17_s10, %s2705_s18  ;;  %p2711_p5 = scmp.lt.s32.totalorder %s2705_s18, %s2705_s18 }
   0xb   :  { %p2712_p6 = por %p2711_p5, %p2710_p4 }
   0xd   :  { %p2713_p7 = pnand %p2712_p6, %p2706_p3 }
   0xf   :  { %2716 = shalt.err (!%p2713_p7)
}
  0x10   :  { %s2744_s19 = smov 128   ;;  %s2745_s20 = smov 8  }
  0x11   :  { %22 = dma.hbm_to_vmem [thread:$0]  %s4189_s1, 8192, %s17_s10, [#allocation3], %s2744_s19, %s2744_s19, %s2745_s20  }
  0x12   :  { %2739 = dma.done.wait [#allocation3], 8192  }
  0x13   :  { %2740 = vsyncadd [#allocation3], 4294959104  ;;  %v2746_v0 = vmov 0   ;;  %v1864_v1 = vld [vmem:[%s4188_s0 + $0x8] sm:$0xff]  ;;  %v28_v2 = vld [vmem:[%s4188_s0] sm:$0xff] }
  0x14   :  { %2693 = vset.pattern.permute.xlu0 %v2746_v0  ;;  %2694 = vset.pattern.permute.xlu1 %v2746_v0  ;;  %v1868_v3 = vld [vmem:[%s4188_s0 + $0x18] sm:$0xff]  ;;  %v1866_v4 = vld [vmem:[%s4188_s0 + $0x10] sm:$0xff]  ;;  %v75_v5 = vld [vmem:[#allocation2 + $0x80] sm:$0xff]  ;;  %s2749_s0 = smov [#allocation5]  }
  0x15   :  { %38 = vperm.xlu0 %2693, %v1864_v1   ;;  %54 = vperm.xlu1 %2694, %v1868_v3   ;;  %v76_v6 = vld [vmem:[#allocation2 + $0x88] sm:$0xff]  ;;  %v172_v7 = vand.u32 4294901760, %v75_v5  ;;  %v2789_v9 = vld [vmem:[#allocation2] sm:$0xff]  ;;  %v2793_v11 = vld [vmem:[#allocation2 + $0x90] sm:$0xff]  ;;  %s1854_s30 = sshll.u32 %s2749_s0, 4  ;;  %s1855_s30 = int_to_ptr.vmem [resolvable:$true] %s1854_s30 }
  0x16   :  { %v175_v8 = vand.u32 4294901760, %v76_v6  ;;  %v2791_v10 = vld [vmem:[#allocation2 + $0x8] sm:$0xff]  ;;  %v124_v12 = vand.u32 4294901760, %v2789_v9  ;;  %v2797_v14 = vld [vmem:[#allocation2 + $0x98] sm:$0xff]  ;;  %v178_v15 = vand.u32 4294901760, %v2793_v11  ;;  %v2800_v16 = vld [vmem:[#allocation2 + $0x10] sm:$0xff]  ;;  %p2722_p9 = scmp.lt.s32.totalorder %s1855_s30, %s1855_s30 }
  0x17   :  { %v127_v13 = vand.u32 4294901760, %v2791_v10  ;;  %v2802_v17 = vld [vmem:[#allocation2 + $0x18] sm:$0xff]  ;;  %v2804_v18 = vsub.f32 %v75_v5, %v172_v7  ;;  %v181_v20 = vand.u32 4294901760, %v2797_v14  ;;  %v130_v21 = vand.u32 4294901760, %v2800_v16  ;;  %v2864_v42 = vld [vmem:[#allocation2 + $0xa0] sm:$0xff]  ;;  %v2872_v47 = vld [vmem:[#allocation2 + $0xa8] sm:$0xff] }
  0x18   :  { %v2806_v19 = vsub.f32 %v76_v6, %v175_v8  ;;  %v2813_v22 = vsub.f32 %v2789_v9, %v124_v12  ;;  %v2823_v24 = vsub.f32 %v2793_v11, %v178_v15  ;;  %v133_v25 = vand.u32 4294901760, %v2802_v17  ;;  %v2877_v52 = vld [vmem:[#allocation2 + $0x20] sm:$0xff]  ;;  %v2879_v53 = vld [vmem:[#allocation2 + $0x28] sm:$0xff]  ;;  %v2882_v58 = vld [vmem:[#allocation2 + $0xb0] sm:$0xff]  ;;  %s2717_s3 = scalar_lea.vmem %s1855_s30, 128 }
  0x19   :  { %30 = vperm.xlu0 %2693, %v28_v2   ;;  %46 = vperm.xlu1 %2694, %v1866_v4   ;;  %v2818_v23 = vsub.f32 %v2791_v10, %v127_v13  ;;  %v4211_v26 = vand.u32 4294901760, %v2804_v18  ;;  %v2831_v28 = vsub.f32 %v2797_v14, %v181_v20  ;;  %v2836_v29 = vsub.f32 %v2800_v16, %v130_v21  ;;  %v2887_v63 = vld [vmem:[#allocation2 + $0xb8] sm:$0xff]  ;;  %v2896_v4 = vld [vmem:[#allocation2 + $0x30] sm:$0xff]  ;;  %p2718_p8 = scmp.ne.s32.totalorder %s1855_s30, %s2717_s3  ;;  %p2723_p10 = scmp.lt.s32.totalorder %s2717_s3, %s2717_s3 }
  0x1a   :  { %v4209_v27 = vand.u32 4294901760, %v2806_v19  ;;  %v4207_v30 = vand.u32 4294901760, %v2813_v22  ;;  %v4204_v32 = vand.u32 4294901760, %v2823_v24  ;;  %v2844_v33 = vsub.f32 %v2802_v17, %v133_v25  ;;  %v2923_v10 = vld [vmem:[#allocation2 + $0x38] sm:$0xff] }
  0x1b   :  { %v4205_v31 = vand.u32 4294901760, %v2818_v23  ;;  %v351_v34 = vsub.f32 %v2804_v18, %v4211_v26  ;;  %v4203_v36 = vand.u32 4294901760, %v2831_v28  ;;  %v4200_v37 = vand.u32 4294901760, %v2836_v29  ;;  %v3112_v26 = vld [vmem:[#allocation2 + $0x60] sm:$0xff]  ;;  %p2724_p11 = por %p2723_p10, %p2722_p9 }
  0x1c   :  { %v358_v35 = vsub.f32 %v2806_v19, %v4209_v27  ;;  %v239_v38 = vsub.f32 %v2813_v22, %v4207_v30  ;;  %v365_v40 = vsub.f32 %v2823_v24, %v4204_v32  ;;  %v4196_v41 = vand.u32 4294901760, %v2844_v33  ;;  %v3086_v32 = vld [vmem:[#allocation2 + $0xe0] sm:$0xff] }
  0x1d   :  { %v246_v39 = vsub.f32 %v2818_v23, %v4205_v31  ;;  %v352_v43 = vand.u32 4294901760, %v351_v34  ;;  %v372_v45 = vsub.f32 %v2831_v28, %v4203_v36  ;;  %v253_v46 = vsub.f32 %v2836_v29, %v4200_v37  ;;  %p2725_p12 = pnand %p2724_p11, %p2718_p8 }
  0x1e   :  { %v359_v44 = vand.u32 4294901760, %v358_v35  ;;  %v240_v48 = vand.u32 4294901760, %v239_v38  ;;  %v366_v50 = vand.u32 4294901760, %v365_v40  ;;  %v260_v51 = vsub.f32 %v2844_v33, %v4196_v41 }
  0x1f   :  { %v247_v49 = vand.u32 4294901760, %v246_v39  ;;  %v373_v55 = vand.u32 4294901760, %v372_v45  ;;  %v254_v56 = vand.u32 4294901760, %v253_v46  ;;  %v184_v57 = vand.u32 4294901760, %v2864_v42 }
  0x20   :  { %v2334_v54 = vpack.c.bf16 %v359_v44, %v352_v43  ;;  %v261_v60 = vand.u32 4294901760, %v260_v51  ;;  %v187_v61 = vand.u32 4294901760, %v2872_v47  ;;  %v2885_v62 = vpack.c.bf16 %v175_v8, %v172_v7 }
  0x21   :  { %v2336_v59 = vpack.c.bf16 %v247_v49, %v240_v48  ;;  %v2338_v0 = vpack.c.bf16 %v373_v55, %v366_v50  ;;  %v2892_v1 = vsub.f32 %v2864_v42, %v184_v57  ;;  %v136_v2 = vand.u32 4294901760, %v2877_v52 }
  0x22   :  { %2335 = vmatprep.subr.bf16.mxu1 %v2334_v54  ;;  %v139_v3 = vand.u32 4294901760, %v2879_v53  ;;  %v2340_v5 = vpack.c.bf16 %v261_v60, %v254_v56  ;;  %v2901_v6 = vsub.f32 %v2872_v47, %v187_v61  ;;  %2303 = vmatprep.subr.bf16.mxu0 %v2885_v62  ;;  %v2908_v7 = vpack.c.bf16 %v127_v13, %v124_v12  ;;  %v2976_v60 = vld [vmem:[#allocation2 + $0xc0] sm:$0xff] }
  0x23   :  { %2337 = vmatpush3.bf16.msra.mxu1 %v2336_v59  ;;  %v190_v8 = vand.u32 4294901760, %v2882_v58  ;;  %v4195_v34 = vand.u32 4294901760, %v2892_v1  ;;  %v2915_v35 = vsub.f32 %v2877_v52, %v136_v2  ;;  %v193_v9 = vand.u32 4294901760, %v2887_v63  ;;  %v3048_v52 = vld [vmem:[#allocation2 + $0x58] sm:$0xff] }
  0x24   :  { %2339 = vmatprep.subr.bf16.mxu1 %v2338_v0  ;;  %v2920_v38 = vsub.f32 %v2879_v53, %v139_v3  ;;  %v4194_v12 = vand.u32 4294901760, %v2901_v6  ;;  %2305 = vmatpush3.bf16.msra.mxu0 %v2908_v7  ;;  %v2936_v39 = vpack.c.bf16 %v181_v20, %v178_v15  ;;  %v142_v40 = vand.u32 4294901760, %v2896_v4  ;;  %v2978_v0 = vld [vmem:[#allocation2 + $0xc8] sm:$0xff] }
  0x25   :  { %v2930_v13 = vsub.f32 %v2882_v58, %v190_v8  ;;  %v379_v43 = vsub.f32 %v2892_v1, %v4195_v34  ;;  %v4193_v44 = vand.u32 4294901760, %v2915_v35  ;;  %v2947_v46 = vsub.f32 %v2887_v63, %v193_v9 }
  0x26   :  { %v4192_v45 = vand.u32 4294901760, %v2920_v38  ;;  %v386_v11 = vsub.f32 %v2901_v6, %v4194_v12  ;;  %2307 = vmatprep.subr.bf16.mxu0 %v2936_v39  ;;  %v145_v15 = vand.u32 4294901760, %v2923_v10  ;;  %v2958_v20 = vsub.f32 %v2896_v4, %v142_v40 }
  0x27   :  { %2341 = vmatpush3.bf16.msra.mxu1 %v2340_v5  ;;  %v4191_v14 = vand.u32 4294901760, %v2930_v13  ;;  %v380_v48 = vand.u32 4294901760, %v379_v43  ;;  %v267_v49 = vsub.f32 %v2915_v35, %v4193_v44  ;;  %v4197_v51 = vand.u32 4294901760, %v2947_v46 }
  0x28   :  { %v274_v50 = vsub.f32 %v2920_v38, %v4192_v45  ;;  %v387_v54 = vand.u32 4294901760, %v386_v11  ;;  %v4199_v56 = vand.u32 4294901760, %v2958_v20  ;;  %v2974_v59 = vsub.f32 %v2923_v10, %v145_v15  ;;  %v2989_v45 = vld [vmem:[#allocation2 + $0x40] sm:$0xff] }
  0x29   :  { %v393_v55 = vsub.f32 %v2930_v13, %v4191_v14  ;;  %v268_v5 = vand.u32 4294901760, %v267_v49  ;;  %v400_v11 = vsub.f32 %v2947_v46, %v4197_v51  ;;  %v2987_v14 = vpack.c.bf16 %v133_v25, %v130_v21  ;;  %v3000_v21 = vld [vmem:[#allocation2 + $0xd0] sm:$0xff] }
  0x2a   :  { %v275_v43 = vand.u32 4294901760, %v274_v50  ;;  %v2342_v44 = vpack.c.bf16 %v387_v54, %v380_v48  ;;  %v281_v34 = vsub.f32 %v2958_v20, %v4199_v56  ;;  %v4198_v49 = vand.u32 4294901760, %v2974_v59  ;;  %v2995_v50 = vld [vmem:[#allocation2 + $0x48] sm:$0xff] }
  0x2b   :  { %v394_v12 = vand.u32 4294901760, %v393_v55  ;;  %v401_v51 = vand.u32 4294901760, %v400_v11  ;;  %2309 = vmatpush3.bf16.msra.mxu0 %v2987_v14  ;;  %v196_v16 = vand.u32 4294901760, %v2976_v60  ;;  %v199_v17 = vand.u32 4294901760, %v2978_v0 }
  0x2c   :  { %v2344_v41 = vpack.c.bf16 %v275_v43, %v268_v5  ;;  %2343 = vmatprep.subr.bf16.mxu1 %v2342_v44  ;;  %v282_v25 = vand.u32 4294901760, %v281_v34  ;;  %v288_v48 = vsub.f32 %v2974_v59, %v4198_v49  ;;  %v3009_v54 = vpack.c.bf16 %v187_v61, %v184_v57  ;;  %v3012_v5 = vld [vmem:[#allocation2 + $0xd8] sm:$0xff]  ;;  %v3046_v49 = vld [vmem:[#allocation2 + $0x50] sm:$0xff] }
  0x2d   :  { %v148_v55 = vand.u32 4294901760, %v2989_v45  ;;  %v2346_v43 = vpack.c.bf16 %v401_v51, %v394_v12  ;;  %v3017_v34 = vsub.f32 %v2976_v60, %v196_v16  ;;  %v3022_v44 = vsub.f32 %v2978_v0, %v199_v17 }
  0x2e   :  { %2345 = vmatpush3.bf16.msra.mxu1 %v2344_v41  ;;  %v151_v42 = vand.u32 4294901760, %v2995_v50  ;;  %v289_v47 = vand.u32 4294901760, %v288_v48  ;;  %2311 = vmatprep.subr.bf16.mxu0 %v3009_v54  ;;  %v3035_v57 = vpack.c.bf16 %v139_v3, %v136_v2  ;;  %v4215_v61 = vand.u32 4294901760, %v3000_v21 }
  0x2f   :  { %v3029_v41 = vsub.f32 %v2989_v45, %v148_v55  ;;  %2347 = vmatprep.subr.bf16.mxu1 %v2346_v43  ;;  %v4202_v12 = vand.u32 4294901760, %v3017_v34  ;;  %v4201_v51 = vand.u32 4294901760, %v3022_v44  ;;  %v4214_v48 = vand.u32 4294901760, %v3012_v5 }
  0x30   :  { %v3043_v11 = vsub.f32 %v2995_v50, %v151_v42  ;;  %v2348_v53 = vpack.c.bf16 %v289_v47, %v282_v25  ;;  %2313 = vmatpush3.bf16.msra.mxu0 %v3035_v57  ;;  %v3055_v3 = vsub.f32 %v3000_v21, %v4215_v61  ;;  %v3061_v43 = vpack.c.bf16 %v193_v9, %v190_v8  ;;  %v74_v50 = vld [vmem:[#allocation2 + $0x78] sm:$0xff] }
  0x31   :  { %v4206_v2 = vand.u32 4294901760, %v3029_v41  ;;  %v407_v56 = vsub.f32 %v3017_v34, %v4202_v12  ;;  %v414_v25 = vsub.f32 %v3022_v44, %v4201_v51  ;;  %v3073_v37 = vsub.f32 %v3012_v5, %v4214_v48 }
  0x32   :  { %v4208_v47 = vand.u32 4294901760, %v3043_v11  ;;  %2349 = vmatpush3.bf16.msra.mxu1 %v2348_v53  ;;  %v4210_v63 = vand.u32 4294901760, %v3055_v3  ;;  %2315 = vmatprep.subr.bf16.mxu0 %v3061_v43  ;;  %v4212_v8 = vand.u32 4294901760, %v3046_v49  ;;  %v4213_v9 = vand.u32 4294901760, %v3048_v52 }
  0x33   :  { %v295_v58 = vsub.f32 %v3029_v41, %v4206_v2  ;;  %v408_v51 = vand.u32 4294901760, %v407_v56  ;;  %v415_v12 = vand.u32 4294901760, %v414_v25  ;;  %v4218_v53 = vand.u32 4294901760, %v3073_v37  ;;  %v3101_v25 = vld [vmem:[#allocation2 + $0xe8] sm:$0xff] }
  0x34   :  { %v302_v36 = vsub.f32 %v3043_v11, %v4208_v47  ;;  %v421_v2 = vsub.f32 %v3055_v3, %v4210_v63  ;;  %v3094_v30 = vsub.f32 %v3046_v49, %v4212_v8  ;;  %v3099_v56 = vsub.f32 %v3048_v52, %v4213_v9 }
  0x35   :  { %v296_v31 = vand.u32 4294901760, %v295_v58  ;;  %v2350_v47 = vpack.c.bf16 %v415_v12, %v408_v51  ;;  %v428_v58 = vsub.f32 %v3073_v37, %v4218_v53  ;;  %v3110_v63 = vpack.c.bf16 %v145_v15, %v142_v40 }
  0x36   :  { %v303_v27 = vand.u32 4294901760, %v302_v36  ;;  %v422_v8 = vand.u32 4294901760, %v421_v2  ;;  %v4217_v9 = vand.u32 4294901760, %v3094_v30  ;;  %v4216_v48 = vand.u32 4294901760, %v3099_v56  ;;  %v72_v36 = vld [vmem:[#allocation2 + $0x68] sm:$0xff]  ;;  %v89_v2 = vld [vmem:[#allocation2 + $0xf0] sm:$0xff] }
  0x37   :  { %4297 = vst [vmem:[#allocation8_spill] sm:$0xff] %v3110_v63  ;;  %v208_v12 = vand.u32 4294901760, %v3086_v32  ;;  %2351 = vmatprep.subr.bf16.mxu1 %v2350_v47  ;;  %v429_v61 = vand.u32 4294901760, %v428_v58  ;;  %2317 = vmatpush3.bf16.msra.mxu0 %v3110_v63  ;;  %v211_v4 = vand.u32 4294901760, %v3101_v25  ;;  %v3123_v10 = vpack.c.bf16 %v199_v17, %v196_v16  ;;  %v90_v47 = vld [vmem:[#allocation2 + $0xf8] sm:$0xff] }
  0x38   :  { %v2352_v51 = vpack.c.bf16 %v303_v27, %v296_v31  ;;  %v309_v40 = vsub.f32 %v3094_v30, %v4217_v9  ;;  %v316_v15 = vsub.f32 %v3099_v56, %v4216_v48  ;;  %v160_v31 = vand.u32 4294901760, %v3112_v26 }
  0x39   :  { %4298 = vst [vmem:[#allocation9_spill] sm:$0xff] %v3123_v10  ;;  %v3132_v27 = vsub.f32 %v3086_v32, %v208_v12  ;;  %v2354_v60 = vpack.c.bf16 %v429_v61, %v422_v8  ;;  %v3136_v0 = vsub.f32 %v3101_v25, %v211_v4  ;;  %2319 = vmatprep.subr.bf16.mxu0 %v3123_v10  ;;  %v163_v16 = vand.u32 4294901760, %v72_v36 }
  0x3a   :  { %2353 = vmatpush3.bf16.msra.mxu1 %v2352_v51  ;;  %v3143_v17 = vpack.c.bf16 %v151_v42, %v148_v55  ;;  %v310_v32 = vand.u32 4294901760, %v309_v40  ;;  %v317_v58 = vand.u32 4294901760, %v316_v15  ;;  %v3147_v9 = vsub.f32 %v3112_v26, %v160_v31  ;;  %v73_v51 = vld [vmem:[#allocation2 + $0x70] sm:$0xff] }
  0x3b   :  { %v4222_v48 = vand.u32 4294901760, %v3132_v27  ;;  %2355 = vmatprep.subr.bf16.mxu1 %v2354_v60  ;;  %v4221_v61 = vand.u32 4294901760, %v3136_v0  ;;  %v3150_v8 = vsub.f32 %v72_v36, %v163_v16  ;;  %v214_v25 = vand.u32 4294901760, %v89_v2 }
  0x3c   :  { %4299 = vst [vmem:[#allocation10_spill] sm:$0xff] %v3143_v17  ;;  %2321 = vmatpush3.bf16.msra.mxu0 %v3143_v17  ;;  %v217_v45 = vand.u32 4294901760, %v90_v47  ;;  %v2356_v55 = vpack.c.bf16 %v317_v58, %v310_v32  ;;  %v4223_v40 = vand.u32 4294901760, %v3147_v9  ;;  %v4300_v26 = vand.u32 4294901760, %v3000_v21 }
  0x3d   :  { %v435_v42 = vsub.f32 %v3132_v27, %v4222_v48  ;;  %v4301_v15 = vand.u32 4294901760, %v3012_v5  ;;  %v442_v36 = vsub.f32 %v3136_v0, %v4221_v61  ;;  %v4230_v53 = vand.u32 4294901760, %v3150_v8 }
  0x3e   :  { %v3167_v17 = vsub.f32 %v89_v2, %v214_v25  ;;  %v3169_v32 = vsub.f32 %v90_v47, %v217_v45  ;;  %2357 = vmatpush3.bf16.msra.mxu1 %v2356_v55  ;;  %v323_v21 = vsub.f32 %v3147_v9, %v4223_v40  ;;  %v166_v5 = vand.u32 4294901760, %v73_v51 }
  0x3f   :  { %v3161_v60 = vpack.c.bf16 %v4301_v15, %v4300_v26  ;;  %v436_v58 = vand.u32 4294901760, %v435_v42  ;;  %v169_v26 = vand.u32 4294901760, %v74_v50  ;;  %v443_v15 = vand.u32 4294901760, %v442_v36 }
  0x40   :  { %v330_v61 = vsub.f32 %v3150_v8, %v4230_v53  ;;  %v4232_v2 = vand.u32 4294901760, %v3167_v17  ;;  %v4231_v47 = vand.u32 4294901760, %v3169_v32  ;;  %v324_v48 = vand.u32 4294901760, %v323_v21 }
  0x41   :  { %4302 = vst [vmem:[#allocation11_spill] sm:$0xff] %v3161_v60  ;;  %2323 = vmatprep.subr.bf16.mxu0 %v3161_v60  ;;  %v3180_v55 = vsub.f32 %v73_v51, %v166_v5  ;;  %v3182_v42 = vsub.f32 %v74_v50, %v169_v26  ;;  %v4303_v40 = vand.u32 4294901760, %v3046_v49  ;;  %v4304_v60 = vand.u32 4294901760, %v3048_v52 }
  0x42   :  { %v2358_v36 = vpack.c.bf16 %v443_v15, %v436_v58  ;;  %v331_v63 = vand.u32 4294901760, %v330_v61  ;;  %v449_v53 = vsub.f32 %v3167_v17, %v4232_v2  ;;  %v456_v21 = vsub.f32 %v3169_v32, %v4231_v47 }
  0x43   :  { %v3188_v10 = vpack.c.bf16 %v4304_v60, %v4303_v40  ;;  %v336_v51 = vand.u32 4294901760, %v3180_v55  ;;  %v343_v50 = vand.u32 4294901760, %v3182_v42  ;;  %v3199_v49 = vpack.c.bf16 %v211_v4, %v208_v12 }
  0x44   :  { %v3201_v52 = vpack.c.bf16 %v163_v16, %v160_v31  ;;  %2359 = vmatprep.subr.bf16.mxu1 %v2358_v36  ;;  %v2360_v61 = vpack.c.bf16 %v331_v63, %v324_v48  ;;  %v450_v40 = vand.u32 4294901760, %v449_v53  ;;  %v457_v60 = vand.u32 4294901760, %v456_v21 }
  0x45   :  { %2325 = vmatpush3.bf16.msra.mxu0 %v3188_v10  ;;  %v3203_v58 = vpack.c.bf16 %v217_v45, %v214_v25  ;;  %v337_v15 = vsub.f32 %v3180_v55, %v336_v51  ;;  %v344_v47 = vsub.f32 %v3182_v42, %v343_v50  ;;  %v3208_v2 = vpack.c.bf16 %v169_v26, %v166_v5 }
  0x46   :  { %2327 = vmatprep.subr.bf16.mxu0 %v3199_v49  ;;  %v2366_v12 = vpack.c.bf16 %v2806_v19, %v2804_v18  ;;  %2361 = vmatpush3.bf16.msra.mxu1 %v2360_v61  ;;  %v2362_v4 = vpack.c.bf16 %v457_v60, %v450_v40  ;;  %v4306_v61 = vand.u32 4294901760, %v2806_v19  ;;  %v4307_v60 = vand.u32 4294901760, %v2813_v22 }
  0x47   :  { %v338_v31 = vand.u32 4294901760, %v337_v15  ;;  %v345_v16 = vand.u32 4294901760, %v344_v47  ;;  %v4308_v21 = vand.u32 4294901760, %v2818_v23  ;;  %v4310_v47 = vand.u32 4294901760, %v2831_v28 }
  0x48   :  { %2363 = vmatprep.subr.bf16.mxu1 %v2362_v4  ;;  %v4309_v4 = vand.u32 4294901760, %v2823_v24  ;;  %v4312_v19 = vand.u32 4294901760, %v2844_v33  ;;  %v4318_v26 = vand.u32 4294901760, %v2947_v46 }
  0x49   :  { %2329 = vmatpush3.bf16.msra.mxu0 %v3201_v52  ;;  %v2364_v36 = vpack.c.bf16 %v345_v16, %v338_v31  ;;  %v4305_v16 = vand.u32 4294901760, %v2804_v18  ;;  %v3255_v15 = vpack.c.bf16 %v4308_v21, %v4307_v60  ;;  %v4311_v18 = vand.u32 4294901760, %v2836_v29 }
  0x4a   :  { %2331 = vmatprep.subr.bf16.mxu0 %v3203_v58  ;;  %v3261_v31 = vpack.c.bf16 %v4310_v47, %v4309_v4  ;;  %v4314_v21 = vand.u32 4294901760, %v2901_v6  ;;  %v4316_v47 = vand.u32 4294901760, %v2920_v38 }
  0x4b   :  { %2365 = vmatpush3.bf16.msra.mxu1 %v2364_v36  ;;  %v3249_v40 = vpack.c.bf16 %v4306_v61, %v4305_v16  ;;  %v3268_v36 = vpack.c.bf16 %v4312_v19, %v4311_v18  ;;  %v4313_v61 = vand.u32 4294901760, %v2892_v1  ;;  %v4315_v16 = vand.u32 4294901760, %v2915_v35 }
  0x4c   :  { %2399 = vmatprep.subr.bf16.mxu1 %v2885_v62  ;;  %v4319_v18 = vand.u32 4294901760, %v2958_v20  ;;  %v4320_v19 = vand.u32 4294901760, %v2974_v59 }
  0x4d   :  { %2333 = vmatpush3.bf16.msra.mxu0 %v3208_v2  ;;  %v3274_v60 = vpack.c.bf16 %v4314_v21, %v4313_v61  ;;  %v3280_v4 = vpack.c.bf16 %v4316_v47, %v4315_v16  ;;  %v4322_v61 = vand.u32 4294901760, %v3017_v34  ;;  %v4323_v21 = vand.u32 4294901760, %v3022_v44 }
  0x4e   :  { %2367 = vmatprep.subr.bf16.mxu0 %v2366_v12  ;;  %v4317_v12 = vand.u32 4294901760, %v2930_v13  ;;  %v3292_v45 = vpack.c.bf16 %v4320_v19, %v4319_v18  ;;  %v4325_v16 = vand.u32 4294901760, %v3029_v41  ;;  %v4326_v47 = vand.u32 4294901760, %v3043_v11 }
  0x4f   :  { %v3298_v25 = vpack.c.bf16 %v4323_v21, %v4322_v61  ;;  %v4331_v18 = vand.u32 4294901760, %v3094_v30  ;;  %v4332_v19 = vand.u32 4294901760, %v3099_v56  ;;  %v4334_v61 = vand.u32 4294901760, %v3132_v27 }
  0x50   :  { %v3286_v5 = vpack.c.bf16 %v4318_v26, %v4317_v12  ;;  %4321 = vst [vmem:[#allocation12_spill] sm:$0xff] %v3292_v45  ;;  %v3304_v53 = vpack.c.bf16 %v4326_v47, %v4325_v16  ;;  %v4328_v26 = vand.u32 4294901760, %v3055_v3  ;;  %v4329_v12 = vand.u32 4294901760, %v3073_v37 }
  0x51   :  { %4324 = vst [vmem:[#allocation13_spill] sm:$0xff] %v3298_v25  ;;  %v3316_v48 = vpack.c.bf16 %v4332_v19, %v4331_v18  ;;  %v4335_v21 = vand.u32 4294901760, %v3136_v0  ;;  %v4336_v16 = vand.u32 4294901760, %v3147_v9  ;;  %v4337_v47 = vand.u32 4294901760, %v3150_v8 }
  0x52   :  { %4327 = vst [vmem:[#allocation14_spill] sm:$0xff] %v3304_v53  ;;  %v3310_v63 = vpack.c.bf16 %v4329_v12, %v4328_v26  ;;  %v4338_v26 = vand.u32 4294901760, %v3167_v17  ;;  %v4339_v12 = vand.u32 4294901760, %v3169_v32  ;;  %v3336_v18 = vpack.c.bf16 %v343_v50, %v336_v51 }
  0x53   :  { %4333 = vst [vmem:[#allocation16_spill] sm:$0xff] %v3316_v48  ;;  %v3322_v25 = vpack.c.bf16 %v4335_v21, %v4334_v61  ;;  %v3328_v53 = vpack.c.bf16 %v4337_v47, %v4336_v16  ;;  %v26_v19 = vlaneseq  ;;  %v4233_v61 = vmov 0.0  }
  0x54   :  { %4330 = vst [vmem:[#allocation15_spill] sm:$0xff] %v3310_v63  ;;  %v3334_v63 = vpack.c.bf16 %v4339_v12, %v4338_v26  ;;  %4341 = vst [vmem:[#allocation18_spill] sm:$0xff] %v3336_v18  ;;  %v4241_v16 = vmov 1.0  }
  0x55   :  { %v3338_v48 = vand.u32 127, %v26_v19 }
  0x56   :  { %4340 = vst [vmem:[#allocation17_spill] sm:$0xff] %v3334_v63 }
  0x94   :  { %v3340_v45 = vpop.permute.xlu0 %38 }
  0x95   :  { %vm40_vm0 = vcmp.eq.s32.totalorder %v3340_v45, %v3338_v48 }
  0x96   :  { %v1865_v21 = vsel %vm40_vm0, 1.0, %v4233_v61  ;;  %1870 = vmatprep.mubr.msk.f32.mxu1 %vm40_vm0, %v4241_v16 }
  0x97   :  { %v220_v51 = vsub.f32 %v1865_v21, %v1865_v21 }
  0x98   :  { %v3352_v50 = vpop.permute.xlu0 %30 }
  0x99   :  { %vm32_vm1 = vcmp.eq.s32.totalorder %v3352_v50, %v3338_v48  ;;  %v221_v47 = vand.u32 4294901760, %v220_v51 }
  0x9a   :  { %v1863_v26 = vsel %vm32_vm1, 1.0, %v4233_v61  ;;  %1871 = vmatmul.mubr.msk.f32.vlgmr.msra.gmra.mrb[0].mxu1 %vm32_vm1, %v4241_v16 }
  0x9b   :  { %v3364_v12 = vsub.f32 %v1863_v26, %v1863_v26  ;;  %2401 = vmatpush3.bf16.msra.mxu1 %v2908_v7  ;;  %704 = vmatprep.mubr.f32.mxu1 %v221_v47  ;;  %v222_v19 = vsub.f32 %v220_v51, %v221_v47  ;;  %v4342_v26 = vpack.c.bf16 %v2818_v23, %v2813_v22  ;;  %v4348_v22 = vld [vmem:[#allocation10_spill] sm:$0xff] }
  0x9c   :  { %2403 = vmatprep.subr.bf16.mxu1 %v2936_v39  ;;  %v4343_v47 = vpack.c.bf16 %v2831_v28, %v2823_v24  ;;  %v4349_v23 = vpack.c.bf16 %v2920_v38, %v2915_v35  ;;  %v4350_v24 = vld [vmem:[#allocation11_spill] sm:$0xff]  ;;  %v4351_v28 = vpack.c.bf16 %v2947_v46, %v2930_v13  ;;  %v4356_v35 = vpack.c.bf16 %v2974_v59, %v2958_v20  ;;  %v3411_v46 = vld [vmem:[#allocation2 + $0x170] sm:$0xff] }
  0x9d   :  { %v223_v21 = vand.u32 4294901760, %v222_v19  ;;  %v227_v18 = vand.u32 4294901760, %v3364_v12  ;;  %v4344_v19 = vld [vmem:[#allocation8_spill] sm:$0xff]  ;;  %4357 = vst [vmem:[#allocation19_spill] sm:$0xff] %v3411_v46  ;;  %v4238_v20 = vand.u32 4294901760, %v3411_v46 }
  0x9f   :  { %2405 = vmatpush3.bf16.msra.mxu1 %v2987_v14  ;;  %224 = vmatprep.mubr.f32.mxu0 %v223_v21  ;;  %v228_v61 = vsub.f32 %v3364_v12, %v227_v18  ;;  %v4345_v21 = vpack.c.bf16 %v2844_v33, %v2836_v29  ;;  %v3396_v29 = vld [vmem:[#allocation2 + $0x160] sm:$0xff]  ;;  %v3398_v33 = vld [vmem:[#allocation2 + $0x168] sm:$0xff] }
  0xa0   :  { %2407 = vmatprep.subr.bf16.mxu1 %v3009_v54  ;;  %4352 = vst [vmem:[#allocation8_spill] sm:$0xff] %v3396_v29  ;;  %v4239_v38 = vand.u32 4294901760, %v3396_v29  ;;  %v4237_v13 = vand.u32 4294901760, %v3398_v33 }
  0xa1   :  { %v229_v63 = vand.u32 4294901760, %v228_v61  ;;  %v4346_v61 = vld [vmem:[#allocation9_spill] sm:$0xff] }
  0xa2   :  { %4353 = vst [vmem:[#allocation9_spill] sm:$0xff] %v3398_v33 }
  0xa3   :  { %2409 = vmatpush3.bf16.msra.mxu1 %v3035_v57  ;;  %230 = vmatmul.mubr.f32.vlgmr.msra.gmra.mrb[0].mxu0 %v229_v63  ;;  %v4347_v63 = vpack.c.bf16 %v2901_v6, %v2892_v1  ;;  %v3401_v1 = vld [vmem:[#allocation2 + $0x1f0] sm:$0xff]  ;;  %v3403_v6 = vld [vmem:[#allocation2 + $0x1f8] sm:$0xff] }
  0xa4   :  { %2369 = vmatpush3.bf16.msra.mxu0 %v4342_v26  ;;  %597 = vmatprep.mubr.f32.mxu0 %v220_v51  ;;  %4354 = vst [vmem:[#allocation10_spill] sm:$0xff] %v3401_v1  ;;  %4355 = vst [vmem:[#allocation11_spill] sm:$0xff] %v3403_v6  ;;  %v3413_v51 = vld [vmem:[#allocation2 + $0x178] sm:$0xff]  ;;  %v4359_v26 = vpack.c.bf16 %v3022_v44, %v3017_v34  ;;  %v3430_v34 = vsub.f32 %v3396_v29, %v4239_v38 }
  0xa5   :  { %2411 = vmatprep.subr.bf16.mxu1 %v3061_v43  ;;  %2371 = vmatprep.subr.bf16.mxu0 %v4343_v47  ;;  %4358 = vst [vmem:[#allocation20_spill] sm:$0xff] %v3413_v51  ;;  %v4236_v47 = vand.u32 4294901760, %v3401_v1  ;;  %v4240_v59 = vand.u32 4294901760, %v3413_v51  ;;  %v3435_v44 = vsub.f32 %v3398_v33, %v4237_v13  ;;  %v4363_v38 = vpack.c.bf16 %v3136_v0, %v3132_v27 }
  0xa6   :  { %v4364_v27 = vand.u32 4294901760, %v3430_v34 }
  0xa7   :  { %2413 = vmatpush3.bf16.msra.mxu1 %v4344_v19  ;;  %v4365_v0 = vand.u32 4294901760, %v3435_v44 }
  0xa8   :  { %2373 = vmatpush3.bf16.msra.mxu0 %v4345_v21  ;;  %2415 = vmatprep.subr.bf16.mxu1 %v4346_v61  ;;  %v4235_v21 = vand.u32 4294901760, %v3403_v6 }
  0xa9   :  { %2375 = vmatprep.subr.bf16.mxu0 %v4347_v63  ;;  %v4360_v63 = vpack.c.bf16 %v3043_v11, %v3029_v41  ;;  %v3442_v41 = vld [vmem:[#allocation2 + $0x188] sm:$0xff]  ;;  %v3444_v11 = vld [vmem:[#allocation2 + $0x100] sm:$0xff] }
  0xab   :  { %2417 = vmatpush3.bf16.msra.mxu1 %v4348_v22 }
  0xac   :  { %2377 = vmatpush3.bf16.msra.mxu0 %v4349_v23  ;;  %2419 = vmatprep.subr.bf16.mxu1 %v4350_v24  ;;  %v4361_v23 = vpack.c.bf16 %v3073_v37, %v3055_v3  ;;  %v3457_v37 = vld [vmem:[#allocation2 + $0x108] sm:$0xff]  ;;  %v3462_v3 = vsub.f32 %v3411_v46, %v4238_v20  ;;  %v4368_v20 = vpack.c.bf16 %v3150_v8, %v3147_v9 }
  0xad   :  { %2379 = vmatprep.subr.bf16.mxu0 %v4351_v28  ;;  %v3440_v28 = vld [vmem:[#allocation2 + $0x180] sm:$0xff]  ;;  %v3524_v9 = vld [vmem:[#allocation2 + $0x1a8] sm:$0xff] }
  0xae   :  { %v4244_v16 = vand.u32 4294901760, %v3462_v3 }
  0xaf   :  { %2421 = vmatpush3.bf16.msra.mxu1 %v3188_v10 }
  0xb0   :  { %2381 = vmatpush3.bf16.msra.mxu0 %v4356_v35  ;;  %2423 = vmatprep.subr.bf16.mxu1 %v3199_v49  ;;  %v3449_v35 = vsub.f32 %v3401_v1, %v4236_v47  ;;  %v3475_v47 = vld [vmem:[#allocation2 + $0x198] sm:$0xff] }
  0xb1   :  { %2383 = vmatprep.subr.bf16.mxu0 %v4359_v26  ;;  %v3454_v26 = vsub.f32 %v3403_v6, %v4235_v21  ;;  %v3473_v21 = vld [vmem:[#allocation2 + $0x190] sm:$0xff] }
  0xb2   :  { %v4243_v13 = vand.u32 4294901760, %v3449_v35 }
  0xb3   :  { %2425 = vmatpush3.bf16.msra.mxu1 %v3201_v52 }
  0xb4   :  { %2385 = vmatpush3.bf16.msra.mxu0 %v4360_v63  ;;  %2427 = vmatprep.subr.bf16.mxu1 %v3203_v58  ;;  %v3467_v63 = vsub.f32 %v3413_v51, %v4240_v59  ;;  %v3522_v59 = vld [vmem:[#allocation2 + $0x1a0] sm:$0xff] }
  0xb5   :  { %2387 = vmatprep.subr.bf16.mxu0 %v4361_v23  ;;  %v4362_v23 = vpack.c.bf16 %v3099_v56, %v3094_v30  ;;  %v3485_v56 = vld [vmem:[#allocation2 + $0x110] sm:$0xff]  ;;  %v4367_v30 = vmov 1.0   ;;  %v4456_v50 = vand.u32 4294901760, %v3522_v59 }
  0xb7   :  { %2429 = vmatpush3.bf16.msra.mxu1 %v3208_v2 }
  0xb8   :  { %2389 = vmatpush3.bf16.msra.mxu0 %v4362_v23  ;;  %2463 = vmatprep.subr.bf16.mxu1 %v2885_v62  ;;  %v3488_v23 = vld [vmem:[#allocation2 + $0x118] sm:$0xff]  ;;  %v4371_v62 = vpack.c.bf16 %v3169_v32, %v3167_v17  ;;  %v4376_v17 = vand.u32 4294901760, %v3442_v41 }
  0xb9   :  { %2391 = vmatprep.subr.bf16.mxu0 %v4363_v38  ;;  %v3496_v38 = vpack.c.bf16 %v4365_v0, %v4364_v27  ;;  %v4369_v27 = vand.u32 4294901760, %v3454_v26 }
  0xba   :  { %708 = vmatmul.mubr.f32.vlgmr.msra.gmra.mrb[2].mxu1 %v227_v18  ;;  %v3540_v32 = vsub.f32 %v3442_v41, %v4376_v17  ;;  %v4384_v17 = vand.u32 4294901760, %v3475_v47 }
  0xbb   :  { %4366 = vst [vmem:[#allocation21_spill] sm:$0xff] %v3496_v38  ;;  %2465 = vmatpush3.bf16.msra.mxu1 %v2908_v7  ;;  %1874 = vmatprep.mubr.msk.f32.mxu1 %vm40_vm0, %v4367_v30  ;;  %v3516_v0 = vpack.c.bf16 %v4369_v27, %v4243_v13 }
  0xbc   :  { %2393 = vmatpush3.bf16.msra.mxu0 %v4368_v20  ;;  %2467 = vmatprep.subr.bf16.mxu1 %v2936_v39  ;;  %v4372_v39 = vand.u32 4294901760, %v3467_v63  ;;  %v4374_v20 = vand.u32 4294901760, %v3440_v28  ;;  %4377 = vst [vmem:[#allocation25_spill] sm:$0xff] %v3540_v32  ;;  %v3561_v7 = vsub.f32 %v3475_v47, %v4384_v17  ;;  %v4389_v17 = vand.u32 4294901760, %v3488_v23 }
  0xbd   :  { %4370 = vst [vmem:[#allocation22_spill] sm:$0xff] %v3516_v0  ;;  %2395 = vmatprep.subr.bf16.mxu0 %v4371_v62  ;;  %v4378_v62 = vand.u32 4294901760, %v3444_v11 }
  0xbe   :  { %v3530_v8 = vpack.c.bf16 %v4372_v39, %v4244_v16  ;;  %v3535_v27 = vsub.f32 %v3440_v28, %v4374_v20  ;;  %v4380_v39 = vand.u32 4294901760, %v3457_v37  ;;  %v4382_v20 = vand.u32 4294901760, %v3473_v21  ;;  %4385 = vst [vmem:[#allocation29_spill] sm:$0xff] %v3561_v7 }
  0xbf   :  { %v3545_v13 = vsub.f32 %v3444_v11, %v4378_v62  ;;  %2469 = vmatpush3.bf16.msra.mxu1 %v2987_v14  ;;  %v4386_v62 = vpack.c.bf16 %v3182_v42, %v3180_v55  ;;  %v4387_v14 = vand.u32 4294901760, %v3485_v56  ;;  %v3578_v0 = vsub.f32 %v3488_v23, %v4389_v17  ;;  %v3580_v55 = vld [vmem:[#allocation2 + $0x120] sm:$0xff] }
  0xc0   :  { %4373 = vst [vmem:[#allocation23_spill] sm:$0xff] %v3530_v8  ;;  %4375 = vst [vmem:[#allocation24_spill] sm:$0xff] %v3535_v27  ;;  %v3551_v16 = vsub.f32 %v3457_v37, %v4380_v39  ;;  %v3556_v18 = vsub.f32 %v3473_v21, %v4382_v20  ;;  %2471 = vmatprep.subr.bf16.mxu1 %v3009_v54  ;;  %v4245_v8 = vand.u32 4294901760, %v3522_v59  ;;  %v4246_v54 = vand.u32 4294901760, %v3535_v27  ;;  %v3606_v20 = vld [vmem:[#allocation2 + $0x128] sm:$0xff] }
  0xc1   :  { %4379 = vst [vmem:[#allocation26_spill] sm:$0xff] %v3545_v13  ;;  %2397 = vmatpush3.bf16.msra.mxu0 %v4386_v62  ;;  %v3570_v39 = vsub.f32 %v3485_v56, %v4387_v14  ;;  %4390 = vst [vmem:[#allocation31_spill] sm:$0xff] %v3578_v0  ;;  %v4247_v42 = vand.u32 4294901760, %v3540_v32  ;;  %v4248_v62 = vand.u32 4294901760, %v3545_v13  ;;  %v3621_v14 = vld [vmem:[#allocation2 + $0x1b0] sm:$0xff] }
  0xc2   :  { %4381 = vst [vmem:[#allocation27_spill] sm:$0xff] %v3551_v16  ;;  %4383 = vst [vmem:[#allocation28_spill] sm:$0xff] %v3556_v18  ;;  %2431 = vmatprep.subr.bf16.mxu0 %v3249_v40 }
  0xc3   :  { %4388 = vst [vmem:[#allocation30_spill] sm:$0xff] %v3570_v39  ;;  %2473 = vmatpush3.bf16.msra.mxu1 %v3035_v57  ;;  %v4392_v57 = vand.u32 4294901760, %v3524_v9  ;;  %v1220_v17 = vsub.f32 %v3540_v32, %v4247_v42  ;;  %v4396_v42 = vand.u32 4294901760, %v3561_v7 }
  0xc4   :  { %600 = vmatmul.mubr.f32.vlgmr.msra.gmra.mrb[2].mxu0 %v3364_v12  ;;  %v3599_v12 = vsub.f32 %v3522_v59, %v4245_v8  ;;  %2475 = vmatprep.subr.bf16.mxu1 %v3061_v43  ;;  %v1213_v8 = vsub.f32 %v3535_v27, %v4246_v54  ;;  %v4394_v43 = vand.u32 4294901760, %v3551_v16  ;;  %v4395_v54 = vand.u32 4294901760, %v3556_v18 }
  0xc5   :  { %2433 = vmatpush3.bf16.msra.mxu0 %v3255_v15  ;;  %1872 = vmatprep.mubr.msk.f32.mxu0 %vm40_vm0, %v4367_v30  ;;  %v3604_v40 = vsub.f32 %v3524_v9, %v4392_v57  ;;  %v1101_v57 = vsub.f32 %v3545_v13, %v4248_v62  ;;  %v3623_v15 = vld [vmem:[#allocation2 + $0x1b8] sm:$0xff]  ;;  %v1234_v38 = vsub.f32 %v3561_v7, %v4396_v42  ;;  %v4400_v42 = vand.u32 4294901760, %v3578_v0  ;;  %v3654_v7 = vld [vmem:[#allocation2 + $0x130] sm:$0xff] }
  0xc6   :  { %4391 = vst [vmem:[#allocation32_spill] sm:$0xff] %v3599_v12  ;;  %2435 = vmatprep.subr.bf16.mxu0 %v3261_v31  ;;  %v1108_v31 = vsub.f32 %v3551_v16, %v4394_v43  ;;  %v1227_v45 = vsub.f32 %v3556_v18, %v4395_v54  ;;  %v4398_v54 = vand.u32 4294901760, %v3580_v55  ;;  %v4265_v62 = vand.u32 4294901760, %v3623_v15 }
  0xc7   :  { %4393 = vst [vmem:[#allocation33_spill] sm:$0xff] %v3604_v40  ;;  %2477 = vmatpush3.bf16.msra.mxu1 %v4344_v19  ;;  %v4397_v19 = vand.u32 4294901760, %v3570_v39  ;;  %v1102_v43 = vand.u32 4294901760, %v1101_v57  ;;  %v1235_v32 = vand.u32 4294901760, %v1234_v38  ;;  %v4404_v38 = vand.u32 4294901760, %v3604_v40 }
  0xc8   :  { %2479 = vmatprep.subr.bf16.mxu1 %v4346_v61  ;;  %v3646_v18 = vsub.f32 %v3580_v55, %v4398_v54  ;;  %v1109_v16 = vand.u32 4294901760, %v1108_v31  ;;  %v1228_v54 = vand.u32 4294901760, %v1227_v45  ;;  %v3664_v61 = vld [vmem:[#allocation2 + $0x1c0] sm:$0xff] }
  0xc9   :  { %2437 = vmatpush3.bf16.msra.mxu0 %v3268_v36  ;;  %v1115_v13 = vsub.f32 %v3570_v39, %v4397_v19  ;;  %v1122_v36 = vsub.f32 %v3578_v0, %v4400_v42  ;;  %v1214_v19 = vand.u32 4294901760, %v1213_v8  ;;  %v1221_v39 = vand.u32 4294901760, %v1220_v17  ;;  %v3662_v42 = vld [vmem:[#allocation2 + $0x138] sm:$0xff] }
  0xca   :  { %4399 = vst [vmem:[#allocation34_spill] sm:$0xff] %v3646_v18  ;;  %2439 = vmatprep.subr.bf16.mxu0 %v3274_v60  ;;  %v4401_v60 = vand.u32 4294901760, %v3606_v20  ;;  %v4403_v17 = vand.u32 4294901760, %v3599_v12  ;;  %v1248_v45 = vsub.f32 %v3604_v40, %v4404_v38  ;;  %v3696_v40 = vpack.c.bf16 %v1235_v32, %v1228_v54  ;;  %v3711_v32 = vld [vmem:[#allocation2 + $0x148] sm:$0xff]  ;;  %v3715_v54 = vld [vmem:[#allocation2 + $0x1d8] sm:$0xff] }
  0xcb   :  { %2481 = vmatpush3.bf16.msra.mxu1 %v4348_v22  ;;  %v1116_v8 = vand.u32 4294901760, %v1115_v13  ;;  %v1123_v31 = vand.u32 4294901760, %v1122_v36  ;;  %v4272_v13 = vand.u32 4294901760, %v3654_v7  ;;  %v2526_v38 = vpack.c.bf16 %v1221_v39, %v1214_v19  ;;  %v3691_v36 = vpop.permute.xlu1 %54  ;;  %v4409_v39 = vld [vmem:[#allocation12_spill] sm:$0xff] }
  0xcc   :  { %v3660_v27 = vsub.f32 %v3606_v20, %v4401_v60  ;;  %2483 = vmatprep.subr.bf16.mxu1 %v4350_v24  ;;  %v1241_v22 = vsub.f32 %v3599_v12, %v4403_v17  ;;  %v4405_v60 = vand.u32 4294901760, %v3621_v14  ;;  %v3684_v24 = vsub.f32 %v3623_v15, %v4265_v62  ;;  %v3687_v17 = vld [vmem:[#allocation2 + $0x1c8] sm:$0xff]  ;;  %4408 = vst [vmem:[#allocation38_spill] sm:$0xff] %v3691_v36  ;;  %v3699_v12 = vld [vmem:[#allocation2 + $0x140] sm:$0xff]  ;;  %v4412_v62 = vld [vmem:[#allocation13_spill] sm:$0xff] }
  0xcd   :  { %2441 = vmatpush3.bf16.msra.mxu0 %v3280_v4  ;;  %vm56_vm2 = vcmp.eq.s32.totalorder %v3691_v36, %v3338_v48  ;;  %v4410_v57 = vand.u32 4294901760, %v3646_v18  ;;  %v4416_v0 = vand.u32 4294901760, %v3662_v42  ;;  %v4431_v1 = vand.u32 4294901760, %v3715_v54 }
  0xce   :  { %4402 = vst [vmem:[#allocation35_spill] sm:$0xff] %v3660_v27  ;;  %2443 = vmatprep.subr.bf16.mxu0 %v3286_v5  ;;  %v3679_v4 = vsub.f32 %v3621_v14, %v4405_v60  ;;  %4407 = vst [vmem:[#allocation37_spill] sm:$0xff] %v3684_v24  ;;  %v3694_v60 = vpack.c.bf16 %v1109_v16, %v1102_v43  ;;  %v1242_v19 = vand.u32 4294901760, %v1241_v22  ;;  %v1249_v5 = vand.u32 4294901760, %v1248_v45  ;;  %v3713_v43 = vld [vmem:[#allocation2 + $0x1d0] sm:$0xff] }
  0xcf   :  { %2485 = vmatpush3.bf16.msra.mxu1 %v3188_v10  ;;  %v3708_v10 = vsub.f32 %v3646_v18, %v4410_v57  ;;  %4411 = vst [vmem:[#allocation12_spill] sm:$0xff] %v3713_v43  ;;  %v3725_v45 = vsub.f32 %v3654_v7, %v4272_v13  ;;  %v4414_v57 = vand.u32 4294901760, %v3440_v28  ;;  %v4415_v16 = vand.u32 4294901760, %v3442_v41 }
  0xd0   :  { %4406 = vst [vmem:[#allocation36_spill] sm:$0xff] %v3679_v4  ;;  %2487 = vmatprep.subr.bf16.mxu1 %v3199_v49  ;;  %v4420_v22 = vmov 0.0   ;;  %v3754_v49 = vld [vmem:[#allocation2 + $0x158] sm:$0xff]  ;;  %v2534_v51 = vpack.c.bf16 %v1249_v5, %v1242_v19  ;;  %v4423_v41 = vand.u32 4294901760, %v3687_v17  ;;  %v4426_v6 = vand.u32 4294901760, %v3679_v4 }
  0xd1   :  { %2445 = vmatpush3.bf16.msra.mxu0 %v4409_v39  ;;  %v3718_v39 = vpack.c.bf16 %v1123_v31, %v1116_v8  ;;  %4413 = vst [vmem:[#allocation13_spill] sm:$0xff] %v3725_v45  ;;  %v3731_v18 = vpack.c.bf16 %v4415_v16, %v4414_v57  ;;  %v4418_v8 = vand.u32 4294901760, %v3664_v61  ;;  %v1869_v13 = vsel %vm56_vm2, 1.0, %v4420_v22  ;;  %v3752_v57 = vld [vmem:[#allocation2 + $0x150] sm:$0xff] }
  0xd2   :  { %2447 = vmatprep.subr.bf16.mxu0 %v4412_v62  ;;  %v3736_v62 = vsub.f32 %v3662_v42, %v4416_v0  ;;  %v1130_v46 = vand.u32 4294901760, %v3708_v10  ;;  %v3765_v16 = vsub.f32 %v3687_v17, %v4423_v41  ;;  %v4425_v0 = vld [vmem:[#allocation15_spill] sm:$0xff]  ;;  %v3775_v10 = vsub.f32 %v1869_v13, %v1869_v13 }
  0xd3   :  { %v3741_v31 = vsub.f32 %v3664_v61, %v4418_v8  ;;  %2489 = vmatpush3.bf16.msra.mxu1 %v3201_v52  ;;  %v4421_v8 = vld [vmem:[#allocation14_spill] sm:$0xff]  ;;  %v4422_v52 = vand.u32 4294901760, %v3660_v27  ;;  %v4429_v13 = vand.u32 4294901760, %v3711_v32  ;;  %v4430_v41 = vand.u32 4294901760, %v3713_v43 }
  0xd4   :  { %4417 = vst [vmem:[#allocation39_spill] sm:$0xff] %v3736_v62  ;;  %2491 = vmatprep.subr.bf16.mxu1 %v3203_v58  ;;  %4424 = vst [vmem:[#allocation14_spill] sm:$0xff] %v3765_v16  ;;  %v4427_v58 = vand.u32 4294901760, %v3684_v24  ;;  %v4433_v22 = vand.u32 4294901760, %v3725_v45 }
  0xd5   :  { %4419 = vst [vmem:[#allocation40_spill] sm:$0xff] %v3741_v31  ;;  %2449 = vmatpush3.bf16.msra.mxu0 %v4421_v8  ;;  %v1136_v28 = vsub.f32 %v3660_v27, %v4422_v52  ;;  %v1255_v8 = vsub.f32 %v3679_v4, %v4426_v6  ;;  %v3777_v52 = vld [vmem:[#allocation2 + $0x1e0] sm:$0xff]  ;;  %v3779_v27 = vld [vmem:[#allocation2 + $0x1e8] sm:$0xff]  ;;  %v3804_v6 = vsub.f32 %v3715_v54, %v4431_v1  ;;  %v4288_v4 = vand.u32 4294901760, %v3765_v16 }
  0xd6   :  { %2451 = vmatprep.subr.bf16.mxu0 %v4425_v0  ;;  %v1262_v5 = vsub.f32 %v3684_v24, %v4427_v58  ;;  %v4428_v58 = vand.u32 4294901760, %v3699_v12  ;;  %v3794_v24 = vsub.f32 %v3711_v32, %v4429_v13  ;;  %v3799_v0 = vsub.f32 %v3713_v43, %v4430_v41 }
  0xd7   :  { %2493 = vmatpush3.bf16.msra.mxu1 %v3208_v2  ;;  %v4432_v2 = vld [vmem:[#allocation16_spill] sm:$0xff]  ;;  %v1256_v29 = vand.u32 4294901760, %v1255_v8  ;;  %v1143_v43 = vsub.f32 %v3725_v45, %v4433_v22  ;;  %v4436_v8 = vand.u32 4294901760, %v3752_v57  ;;  %v4437_v22 = vand.u32 4294901760, %v3754_v49 }
  0xd8   :  { %v3789_v19 = vsub.f32 %v3699_v12, %v4428_v58  ;;  %2527 = vmatprep.subr.bf16.mxu1 %v2526_v38  ;;  %v1137_v58 = vand.u32 4294901760, %v1136_v28  ;;  %v1263_v41 = vand.u32 4294901760, %v1262_v5  ;;  %v4434_v38 = vand.u32 4294901760, %v3736_v62 }
  0xd9   :  { %2453 = vmatpush3.bf16.msra.mxu0 %v4432_v2  ;;  %v4435_v2 = vand.u32 4294901760, %v3741_v31  ;;  %v3828_v5 = vsub.f32 %v3752_v57, %v4436_v8  ;;  %v3833_v1 = vsub.f32 %v3754_v49, %v4437_v22  ;;  %v4438_v8 = vand.u32 4294901760, %v3777_v52 }
  0xda   :  { %2455 = vmatprep.subr.bf16.mxu0 %v3322_v25  ;;  %1875 = vmatmul.mubr.msk.f32.vlgmr.msra.gmra.mrb[4].mxu1 %vm32_vm1, %v4367_v30  ;;  %v1150_v28 = vsub.f32 %v3736_v62, %v4434_v38  ;;  %v4440_v38 = vld [vmem:[#allocation17_spill] sm:$0xff]  ;;  %v2536_v13 = vpack.c.bf16 %v1137_v58, %v1130_v46  ;;  %v4444_v46 = vand.u32 4294901760, %v3789_v19  ;;  %v4446_v58 = vand.u32 4294901760, %v3799_v0 }
  0xdb   :  { %v1269_v25 = vsub.f32 %v3741_v31, %v4435_v2  ;;  %2529 = vmatpush3.bf16.msra.mxu1 %v3694_v60  ;;  %1876 = vmatprep.mubr.msk.f32.mxu1 %vm56_vm2, %v4367_v30  ;;  %v1276_v60 = vsub.f32 %v3765_v16, %v4288_v4  ;;  %v3852_v22 = vsub.f32 %v3777_v52, %v4438_v8  ;;  %v4439_v2 = vand.u32 4294901760, %v3779_v27 }
  0xdc   :  { %2531 = vmatprep.subr.bf16.mxu1 %v3696_v40  ;;  %v4442_v40 = vand.u32 4294901760, %v3457_v37  ;;  %v1144_v4 = vand.u32 4294901760, %v1143_v43  ;;  %v4443_v16 = vand.u32 4294901760, %v3775_v10  ;;  %v2538_v31 = vpack.c.bf16 %v1263_v41, %v1256_v29 }
  0xdd   :  { %2457 = vmatpush3.bf16.msra.mxu0 %v3328_v53  ;;  %v3857_v33 = vsub.f32 %v3779_v27, %v4439_v2  ;;  %v4441_v53 = vand.u32 4294901760, %v3444_v11  ;;  %v1151_v62 = vand.u32 4294901760, %v1150_v28  ;;  %v1157_v11 = vsub.f32 %v3789_v19, %v4444_v46  ;;  %v4448_v28 = vld [vmem:[#allocation18_spill] sm:$0xff] }
  0xde   :  { %2459 = vmatprep.subr.bf16.mxu0 %v4440_v38  ;;  %v1084_v8 = vsub.f32 %v3775_v10, %v4443_v16  ;;  %v4445_v37 = vand.u32 4294901760, %v3794_v24  ;;  %v1283_v16 = vsub.f32 %v3799_v0, %v4446_v58  ;;  %v4447_v29 = vand.u32 4294901760, %v3804_v6 }
  0xdf   :  { %v3864_v36 = vpack.c.bf16 %v4442_v40, %v4441_v53  ;;  %2533 = vmatpush3.bf16.msra.mxu1 %v3718_v39  ;;  %v1270_v39 = vand.u32 4294901760, %v1269_v25  ;;  %v1277_v38 = vand.u32 4294901760, %v1276_v60  ;;  %v1296_v53 = vand.u32 4294901760, %v3852_v22 }
  0xe0   :  { %v1164_v43 = vsub.f32 %v3794_v24, %v4445_v37  ;;  %v1290_v41 = vsub.f32 %v3804_v6, %v4447_v29  ;;  %2535 = vmatprep.subr.bf16.mxu1 %v2534_v51  ;;  %v4449_v46 = vand.u32 4294901760, %v3473_v21  ;;  %v4450_v37 = vand.u32 4294901760, %v3475_v47 }
  0xe1   :  { %2461 = vmatpush3.bf16.msra.mxu0 %v4448_v28  ;;  %v1085_v2 = vand.u32 4294901760, %v1084_v8  ;;  %v2540_v45 = vpack.c.bf16 %v1151_v62, %v1144_v4  ;;  %v4451_v29 = vand.u32 4294901760, %v3485_v56  ;;  %v4452_v51 = vand.u32 4294901760, %v3488_v23 }
  0xe2   :  { %2495 = vmatprep.subr.bf16.mxu0 %v3731_v18  ;;  %v3892_v58 = vpack.c.bf16 %v4450_v37, %v4449_v46  ;;  %v4453_v60 = vand.u32 4294901760, %v3828_v5  ;;  %v4454_v40 = vand.u32 4294901760, %v3833_v1  ;;  %v1158_v47 = vand.u32 4294901760, %v1157_v11 }
  0xe3   :  { %v3898_v25 = vpack.c.bf16 %v4452_v51, %v4451_v29  ;;  %2537 = vmatpush3.bf16.msra.mxu1 %v2536_v13  ;;  %v1165_v56 = vand.u32 4294901760, %v1164_v43  ;;  %v1284_v4 = vand.u32 4294901760, %v1283_v16  ;;  %v1291_v23 = vand.u32 4294901760, %v1290_v41 }
  0xe4   :  { %v1171_v28 = vsub.f32 %v3828_v5, %v4453_v60  ;;  %v1178_v21 = vsub.f32 %v3833_v1, %v4454_v40  ;;  %1873 = vmatmul.mubr.msk.f32.vlgmr.msra.gmra.mrb[4].mxu0 %vm32_vm1, %v4367_v30  ;;  %2539 = vmatprep.subr.bf16.mxu1 %v2538_v31  ;;  %v2542_v62 = vpack.c.bf16 %v1277_v38, %v1270_v39  ;;  %v4455_v40 = vand.u32 4294901760, %v3857_v33 }
  0xe5   :  { %2497 = vmatpush3.bf16.msra.mxu0 %v3864_v36  ;;  %v1297_v8 = vsub.f32 %v3852_v22, %v1296_v53  ;;  %v4457_v13 = vand.u32 4294901760, %v3524_v9  ;;  %1086 = vmatprep.mubr.f32.mxu0 %v1085_v2  ;;  %v4458_v31 = vand.u32 4294901760, %v3580_v55  ;;  %v4459_v43 = vand.u32 4294901760, %v3606_v20 }
  0xe6   :  { %v1304_v46 = vsub.f32 %v3857_v33, %v4455_v40  ;;  %2499 = vmatprep.subr.bf16.mxu0 %v3892_v58  ;;  %v1172_v41 = vand.u32 4294901760, %v1171_v28  ;;  %v1179_v39 = vand.u32 4294901760, %v1178_v21  ;;  %v2544_v38 = vpack.c.bf16 %v1165_v56, %v1158_v47 }
  0xe7   :  { %v3922_v11 = vpack.c.bf16 %v4457_v13, %v4456_v50  ;;  %v3928_v16 = vpack.c.bf16 %v4459_v43, %v4458_v31  ;;  %2541 = vmatpush3.bf16.msra.mxu1 %v2540_v45  ;;  %v2546_v37 = vpack.c.bf16 %v1291_v23, %v1284_v4  ;;  %v4460_v29 = vand.u32 4294901760, %v3430_v34  ;;  %v3963_v43 = vpop.permute.xlu1 %46 }
  0xe8   :  { %v4461_v9 = vand.u32 4294901760, %v3435_v44  ;;  %2543 = vmatprep.subr.bf16.mxu1 %v2542_v62  ;;  %v1298_v55 = vand.u32 4294901760, %v1297_v8  ;;  %v1305_v20 = vand.u32 4294901760, %v1304_v46  ;;  %v4462_v2 = vand.u32 4294901760, %v3449_v35 }
  0xe9   :  { %v1185_v59 = vsub.f32 %v3430_v34, %v4460_v29  ;;  %2501 = vmatpush3.bf16.msra.mxu0 %v3898_v25  ;;  %v4463_v45 = vand.u32 4294901760, %v3454_v26  ;;  %v4464_v21 = vand.u32 4294901760, %v3621_v14  ;;  %v4465_v47 = vand.u32 4294901760, %v3623_v15 }
  0xea   :  { %v1192_v51 = vsub.f32 %v3435_v44, %v4461_v9  ;;  %v1311_v60 = vsub.f32 %v3449_v35, %v4462_v2  ;;  %2503 = vmatprep.subr.bf16.mxu0 %v3922_v11  ;;  %v2548_v4 = vpack.c.bf16 %v1179_v39, %v1172_v41  ;;  %v4466_v8 = vand.u32 4294901760, %v3462_v3 }
  0xeb   :  { %v1318_v28 = vsub.f32 %v3454_v26, %v4463_v45  ;;  %v3948_v56 = vpack.c.bf16 %v4465_v47, %v4464_v21  ;;  %2545 = vmatpush3.bf16.msra.mxu1 %v2544_v38  ;;  %v1186_v23 = vand.u32 4294901760, %v1185_v59  ;;  %v4467_v46 = vand.u32 4294901760, %v3467_v63 }
  0xec   :  { %v1193_v62 = vand.u32 4294901760, %v1192_v51  ;;  %v1199_v40 = vsub.f32 %v3462_v3, %v4466_v8  ;;  %2547 = vmatprep.subr.bf16.mxu1 %v2546_v37  ;;  %v4468_v14 = vand.u32 4294901760, %v3654_v7  ;;  %v4469_v15 = vand.u32 4294901760, %v3662_v42 }
  0xed   :  { %v1206_v50 = vsub.f32 %v3467_v63, %v4467_v46  ;;  %2505 = vmatpush3.bf16.msra.mxu0 %v3928_v16  ;;  %v2550_v31 = vpack.c.bf16 %v1305_v20, %v1298_v55  ;;  %v1312_v41 = vand.u32 4294901760, %v1311_v60  ;;  %v1319_v39 = vand.u32 4294901760, %v1318_v28 }
  0xee   :  { %v3961_v13 = vpack.c.bf16 %v4469_v15, %v4468_v14  ;;  %2507 = vmatprep.subr.bf16.mxu0 %v3948_v56  ;;  %v4470_v38 = vand.u32 4294901760, %v3664_v61  ;;  %v4471_v29 = vand.u32 4294901760, %v3687_v17  ;;  %vm48_vm3 = vcmp.eq.s32.totalorder %v3963_v43, %v3338_v48  ;;  %v4474_v17 = vld [vmem:[#allocation12_spill] sm:$0xff] }
  0xef   :  { %2549 = vmatpush3.bf16.msra.mxu1 %v2548_v4  ;;  %v2552_v7 = vpack.c.bf16 %v1193_v62, %v1186_v23  ;;  %v1200_v42 = vand.u32 4294901760, %v1199_v40  ;;  %v1207_v37 = vand.u32 4294901760, %v1206_v50  ;;  %v4472_v9 = vand.u32 4294901760, %v3699_v12 }
  0xf0   :  { %v3970_v59 = vpack.c.bf16 %v4471_v29, %v4470_v38  ;;  %2551 = vmatprep.subr.bf16.mxu1 %v2550_v31  ;;  %v4473_v51 = vand.u32 4294901760, %v3711_v32  ;;  %v2554_v61 = vpack.c.bf16 %v1319_v39, %v1312_v41  ;;  %v4475_v20 = vand.u32 4294901760, %v4474_v17  ;;  %v4491_v39 = vld [vmem:[#allocation19_spill] sm:$0xff]  ;;  %v4493_v29 = vld [vmem:[#allocation20_spill] sm:$0xff]  ;;  %v4497_v17 = vld [vmem:[#allocation26_spill] sm:$0xff] }
  0xf1   :  { %2509 = vmatpush3.bf16.msra.mxu0 %v3961_v13  ;;  %v4476_v2 = vand.u32 4294901760, %v3715_v54  ;;  %v4477_v45 = vmov 0.0   ;;  %v2556_v12 = vpack.c.bf16 %v1207_v37, %v1200_v42  ;;  %v4478_v32 = vand.u32 4294901760, %v3752_v57  ;;  %v4482_v57 = vld [vmem:[#allocation8_spill] sm:$0xff] }
  0xf2   :  { %v3979_v55 = vpack.c.bf16 %v4473_v51, %v4472_v9  ;;  %2511 = vmatprep.subr.bf16.mxu0 %v3970_v59  ;;  %v1867_v28 = vsel %vm48_vm3, 1.0, %v4477_v45  ;;  %v4479_v21 = vand.u32 4294901760, %v3754_v49  ;;  %v4480_v54 = vand.u32 4294901760, %v3777_v52  ;;  %v4484_v49 = vld [vmem:[#allocation9_spill] sm:$0xff]  ;;  %v4486_v52 = vld [vmem:[#allocation10_spill] sm:$0xff]  ;;  %v4495_v9 = vld [vmem:[#allocation24_spill] sm:$0xff] }
  0xf3   :  { %v3986_v60 = vpack.c.bf16 %v4476_v2, %v4475_v20  ;;  %2553 = vmatpush3.bf16.msra.mxu1 %v2552_v7  ;;  %v3999_v4 = vsub.f32 %v1867_v28, %v1867_v28  ;;  %v4481_v23 = vand.u32 4294901760, %v3779_v27  ;;  %v4483_v8 = vand.u32 4294901760, %v4482_v57  ;;  %v4488_v27 = vld [vmem:[#allocation11_spill] sm:$0xff]  ;;  %v4496_v51 = vld [vmem:[#allocation25_spill] sm:$0xff]  ;;  %v4499_v28 = vld [vmem:[#allocation28_spill] sm:$0xff] }
  0xf4   :  { %2555 = vmatprep.subr.bf16.mxu1 %v2554_v61  ;;  %v3997_v47 = vpack.c.bf16 %v4479_v21, %v4478_v32  ;;  %v4485_v40 = vand.u32 4294901760, %v4484_v49  ;;  %v4487_v14 = vand.u32 4294901760, %v4486_v52  ;;  %v4489_v15 = vand.u32 4294901760, %v4488_v27  ;;  %v4498_v20 = vld [vmem:[#allocation27_spill] sm:$0xff]  ;;  %v4501_v21 = vld [vmem:[#allocation30_spill] sm:$0xff]  ;;  %v4503_v57 = vld [vmem:[#allocation32_spill] sm:$0xff] }
  0xf5   :  { %2513 = vmatpush3.bf16.msra.mxu0 %v3979_v55  ;;  %v4006_v62 = vpack.c.bf16 %v4481_v23, %v4480_v54  ;;  %v1089_v50 = vand.u32 4294901760, %v3999_v4  ;;  %v4490_v41 = vand.u32 4294901760, %v3775_v10  ;;  %v4492_v38 = vand.u32 4294901760, %v4491_v39  ;;  %v4502_v54 = vld [vmem:[#allocation31_spill] sm:$0xff]  ;;  %v4507_v27 = vld [vmem:[#allocation36_spill] sm:$0xff] }
  0xf6   :  { %2515 = vmatprep.subr.bf16.mxu0 %v3986_v60  ;;  %v4014_v46 = vpack.c.bf16 %v4485_v40, %v4483_v8  ;;  %v4022_v31 = vpack.c.bf16 %v4489_v15, %v4487_v14  ;;  %v4494_v7 = vand.u32 4294901760, %v4493_v29  ;;  %v2558_v61 = vpack.c.bf16 %v4496_v51, %v4495_v9  ;;  %v4504_v8 = vld [vmem:[#allocation33_spill] sm:$0xff]  ;;  %v4505_v40 = vld [vmem:[#allocation34_spill] sm:$0xff]  ;;  %v4506_v52 = vld [vmem:[#allocation35_spill] sm:$0xff] }
  0xf7   :  { %2557 = vmatpush3.bf16.msra.mxu1 %v2556_v12  ;;  %v1090_v37 = vsub.f32 %v3999_v4, %v1089_v50  ;;  %v2560_v2 = vpack.c.bf16 %v4498_v20, %v4497_v17  ;;  %v4500_v12 = vld [vmem:[#allocation29_spill] sm:$0xff]  ;;  %v2564_v23 = vpack.c.bf16 %v4502_v54, %v4501_v21  ;;  %v2566_v49 = vpack.c.bf16 %v4504_v8, %v4503_v57  ;;  %v4510_v39 = vld [vmem:[#allocation39_spill] sm:$0xff]  ;;  %v4511_v29 = vld [vmem:[#allocation40_spill] sm:$0xff] }
  0xf8   :  { %2591 = vmatprep.subr.bf16.mxu1 %v3731_v18  ;;  %v4037_v42 = vpack.c.bf16 %v4494_v7, %v4492_v38  ;;  %v2562_v32 = vpack.c.bf16 %v4500_v12, %v4499_v28  ;;  %v2568_v14 = vpack.c.bf16 %v4506_v52, %v4505_v40  ;;  %v4512_v7 = vld [vmem:[#allocation14_spill] sm:$0xff] }
  0xf9   :  { %2517 = vmatpush3.bf16.msra.mxu0 %v3997_v47  ;;  %v1091_v45 = vand.u32 4294901760, %v1090_v37  ;;  %v2574_v37 = vpack.c.bf16 %v4512_v7, %v4511_v29 }
  0xfa   :  { %2519 = vmatprep.subr.bf16.mxu0 %v4006_v62  ;;  %1877 = vmatmul.mubr.msk.f32.vlgmr.msra.gmra.mrb[6].mxu1 %vm48_vm3, %v4367_v30 }
  0xfb   :  { %2593 = vmatpush3.bf16.msra.mxu1 %v3864_v36  ;;  %1566 = vmatprep.mubr.f32.mxu1 %v4490_v41  ;;  %v4509_v41 = vld [vmem:[#allocation13_spill] sm:$0xff] }
  0xfc   :  { %2595 = vmatprep.subr.bf16.mxu1 %v3892_v58  ;;  %v2572_v38 = vpack.c.bf16 %v4510_v39, %v4509_v41 }
  0xfd   :  { %2521 = vmatpush3.bf16.msra.mxu0 %v4014_v46 }
  0xfe   :  { %2523 = vmatprep.subr.bf16.mxu0 %v4022_v31 }
  0xff   :  { %2597 = vmatpush3.bf16.msra.mxu1 %v3898_v25 }
 0x100   :  { %2599 = vmatprep.subr.bf16.mxu1 %v3922_v11 }
 0x101   :  { %2525 = vmatpush3.bf16.msra.mxu0 %v4037_v42 }
 0x102   :  { %2559 = vmatprep.subr.bf16.mxu0 %v2558_v61  ;;  %v2576_v61 = vpack.c.bf16 %v3794_v24, %v3789_v19 }
 0x103   :  { %2601 = vmatpush3.bf16.msra.mxu1 %v3928_v16 }
 0x104   :  { %1092 = vmatmul.mubr.f32.vlgmr.msra.gmra.mrb[6].mxu0 %v1091_v45  ;;  %2603 = vmatprep.subr.bf16.mxu1 %v3948_v56  ;;  %v2580_v45 = vpack.c.bf16 %v3833_v1, %v3828_v5 }
 0x105   :  { %2561 = vmatpush3.bf16.msra.mxu0 %v2560_v2  ;;  %1459 = vmatprep.mubr.f32.mxu0 %v3775_v10  ;;  %v4508_v10 = vld [vmem:[#allocation37_spill] sm:$0xff]  ;;  %v2578_v2 = vpack.c.bf16 %v3804_v6, %v3799_v0 }
 0x106   :  { %2563 = vmatprep.subr.bf16.mxu0 %v2562_v32  ;;  %v2570_v15 = vpack.c.bf16 %v4508_v10, %v4507_v27  ;;  %v2582_v32 = vpack.c.bf16 %v3857_v33, %v3852_v22 }
 0x107   :  { %2605 = vmatpush3.bf16.msra.mxu1 %v3961_v13 }
 0x108   :  { %2607 = vmatprep.subr.bf16.mxu1 %v3970_v59 }
 0x109   :  { %2565 = vmatpush3.bf16.msra.mxu0 %v2564_v23  ;;  %v2584_v23 = vpack.c.bf16 %v3435_v44, %v3430_v34  ;;  %v4514_v34 = vand.u32 4294901760, %v4495_v9  ;;  %v4515_v44 = vand.u32 4294901760, %v4496_v51  ;;  %v4522_v51 = vand.u32 4294901760, %v4503_v57 }
 0x10a   :  { %2567 = vmatprep.subr.bf16.mxu0 %v2566_v49  ;;  %v2586_v49 = vpack.c.bf16 %v3454_v26, %v3449_v35  ;;  %v4516_v26 = vand.u32 4294901760, %v4497_v17  ;;  %v4530_v57 = vand.u32 4294901760, %v4511_v29 }
 0x10b   :  { %2609 = vmatpush3.bf16.msra.mxu1 %v3979_v55  ;;  %v2622_v35 = vpack.c.bf16 %v4515_v44, %v4514_v34 }
 0x10c   :  { %2611 = vmatprep.subr.bf16.mxu1 %v3986_v60 }
 0x10d   :  { %2569 = vmatpush3.bf16.msra.mxu0 %v2568_v14 }
 0x10e   :  { %2571 = vmatprep.subr.bf16.mxu0 %v2570_v15 }
 0x10f   :  { %2613 = vmatpush3.bf16.msra.mxu1 %v3997_v47 }
 0x110   :  { %2615 = vmatprep.subr.bf16.mxu1 %v4006_v62 }
 0x111   :  { %2573 = vmatpush3.bf16.msra.mxu0 %v2572_v38 }
 0x112   :  { %2575 = vmatprep.subr.bf16.mxu0 %v2574_v37 }
 0x113   :  { %2617 = vmatpush3.bf16.msra.mxu1 %v4014_v46 }
 0x114   :  { %2619 = vmatprep.subr.bf16.mxu1 %v4022_v31 }
 0x115   :  { %2577 = vmatpush3.bf16.msra.mxu0 %v2576_v61 }
 0x116   :  { %2579 = vmatprep.subr.bf16.mxu0 %v2578_v2 }
 0x117   :  { %2621 = vmatpush3.bf16.msra.mxu1 %v4037_v42 }
 0x118   :  { %2655 = vmatprep.subr.bf16.mxu1 %v3731_v18  ;;  %v2588_v18 = vpack.c.bf16 %v3467_v63, %v3462_v3  ;;  %v4519_v3 = vand.u32 4294901760, %v4500_v12  ;;  %v4526_v12 = vand.u32 4294901760, %v4507_v27  ;;  %v4534_v27 = vand.u32 4294901760, %v3799_v0  ;;  %v4539_v0 = vld [vmem:[#allocation21_spill] sm:$0xff] }
 0x119   :  { %2581 = vmatpush3.bf16.msra.mxu0 %v2580_v45 }
 0x11a   :  { %2583 = vmatprep.subr.bf16.mxu0 %v2582_v32  ;;  %1570 = vmatmul.mubr.f32.vlgmr.msra.gmra.mrb[8].mxu1 %v1089_v50 }
 0x11b   :  { %2657 = vmatpush3.bf16.msra.mxu1 %v3864_v36  ;;  %1880 = vmatprep.mubr.msk.f32.mxu1 %vm56_vm2, %v4367_v30  ;;  %v4517_v36 = vand.u32 4294901760, %v4498_v20  ;;  %v4525_v20 = vand.u32 4294901760, %v4506_v52 }
 0x11c   :  { %2659 = vmatprep.subr.bf16.mxu1 %v3892_v58  ;;  %v4518_v58 = vand.u32 4294901760, %v4499_v28 }
 0x11d   :  { %2585 = vmatpush3.bf16.msra.mxu0 %v2584_v23  ;;  %v2624_v50 = vpack.c.bf16 %v4517_v36, %v4516_v26 }
 0x11e   :  { %2587 = vmatprep.subr.bf16.mxu0 %v2586_v49  ;;  %v2626_v63 = vpack.c.bf16 %v4519_v3, %v4518_v58 }
 0x11f   :  { %2661 = vmatpush3.bf16.msra.mxu1 %v3898_v25  ;;  %v4520_v25 = vand.u32 4294901760, %v4501_v21 }
 0x120   :  { %2663 = vmatprep.subr.bf16.mxu1 %v3922_v11  ;;  %v4521_v11 = vand.u32 4294901760, %v4502_v54 }
 0x121   :  { %2589 = vmatpush3.bf16.msra.mxu0 %v2588_v18 }
 0x122   :  { %2623 = vmatprep.subr.bf16.mxu0 %v2622_v35  ;;  %v2628_v9 = vpack.c.bf16 %v4521_v11, %v4520_v25 }
 0x123   :  { %2665 = vmatpush3.bf16.msra.mxu1 %v3928_v16  ;;  %v4524_v16 = vand.u32 4294901760, %v4505_v40 }
 0x124   :  { %1462 = vmatmul.mubr.f32.vlgmr.msra.gmra.mrb[8].mxu0 %v3999_v4  ;;  %2667 = vmatprep.subr.bf16.mxu1 %v3948_v56  ;;  %v4523_v4 = vand.u32 4294901760, %v4504_v8  ;;  %v4527_v56 = vand.u32 4294901760, %v4508_v10  ;;  %v4531_v8 = vand.u32 4294901760, %v4512_v7  ;;  %v4535_v10 = vand.u32 4294901760, %v3804_v6  ;;  %v4540_v6 = vld [vmem:[#allocation22_spill] sm:$0xff] }
 0x125   :  { %2625 = vmatpush3.bf16.msra.mxu0 %v2624_v50  ;;  %1878 = vmatprep.mubr.msk.f32.mxu0 %vm56_vm2, %v4367_v30  ;;  %v2632_v28 = vpack.c.bf16 %v4525_v20, %v4524_v16 }
 0x126   :  { %2627 = vmatprep.subr.bf16.mxu0 %v2626_v63  ;;  %v2630_v17 = vpack.c.bf16 %v4523_v4, %v4522_v51  ;;  %v2634_v21 = vpack.c.bf16 %v4527_v56, %v4526_v12  ;;  %v2638_v40 = vpack.c.bf16 %v4531_v8, %v4530_v57  ;;  %v2642_v15 = vpack.c.bf16 %v4535_v10, %v4534_v27 }
 0x127   :  { %2669 = vmatpush3.bf16.msra.mxu1 %v3961_v13  ;;  %v4528_v13 = vand.u32 4294901760, %v4509_v41 }
 0x128   :  { %2671 = vmatprep.subr.bf16.mxu1 %v3970_v59  ;;  %v4529_v59 = vand.u32 4294901760, %v4510_v39 }
 0x129   :  { %2629 = vmatpush3.bf16.msra.mxu0 %v2628_v9 }
 0x12a   :  { %2631 = vmatprep.subr.bf16.mxu0 %v2630_v17  ;;  %v2636_v54 = vpack.c.bf16 %v4529_v59, %v4528_v13 }
 0x12b   :  { %2673 = vmatpush3.bf16.msra.mxu1 %v3979_v55  ;;  %v4532_v55 = vand.u32 4294901760, %v3789_v19 }
 0x12c   :  { %2675 = vmatprep.subr.bf16.mxu1 %v3986_v60  ;;  %v4533_v60 = vand.u32 4294901760, %v3794_v24  ;;  %v4538_v24 = vand.u32 4294901760, %v3857_v33 }
 0x12d   :  { %2633 = vmatpush3.bf16.msra.mxu0 %v2632_v28 }
 0x12e   :  { %2635 = vmatprep.subr.bf16.mxu0 %v2634_v21  ;;  %v2640_v52 = vpack.c.bf16 %v4533_v60, %v4532_v55  ;;  %v2646_v19 = vpack.c.bf16 %v4538_v24, %v1296_v53 }
 0x12f   :  { %2677 = vmatpush3.bf16.msra.mxu1 %v3997_v47  ;;  %v4536_v47 = vand.u32 4294901760, %v3828_v5 }
 0x130   :  { %2679 = vmatprep.subr.bf16.mxu1 %v4006_v62  ;;  %v4537_v62 = vand.u32 4294901760, %v3833_v1  ;;  %v4541_v1 = vld [vmem:[#allocation23_spill] sm:$0xff] }
 0x131   :  { %2637 = vmatpush3.bf16.msra.mxu0 %v2636_v54 }
 0x132   :  { %2639 = vmatprep.subr.bf16.mxu0 %v2638_v40  ;;  %v2644_v41 = vpack.c.bf16 %v4537_v62, %v4536_v47 }
 0x133   :  { %2681 = vmatpush3.bf16.msra.mxu1 %v4014_v46 }
 0x134   :  { %2683 = vmatprep.subr.bf16.mxu1 %v4022_v31 }
 0x135   :  { %2641 = vmatpush3.bf16.msra.mxu0 %v2640_v52 }
 0x136   :  { %2643 = vmatprep.subr.bf16.mxu0 %v2642_v15 }
 0x137   :  { %2685 = vmatpush3.bf16.msra.mxu1 %v4037_v42 }
 0x139   :  { %2645 = vmatpush3.bf16.msra.mxu0 %v2644_v41 }
 0x13a   :  { %2647 = vmatprep.subr.bf16.mxu0 %v2646_v19  ;;  %1881 = vmatmul.mubr.msk.f32.vlgmr.msra.gmra.mrb[10].mxu1 %vm48_vm3, %v4367_v30 }
 0x13d   :  { %2649 = vmatpush3.bf16.msra.mxu0 %v4539_v0 }
 0x13e   :  { %2651 = vmatprep.subr.bf16.mxu0 %v4540_v6 }
 0x141   :  { %2653 = vmatpush3.bf16.msra.mxu0 %v4541_v1 }
 0x144   :  { %1879 = vmatmul.mubr.msk.f32.vlgmr.msra.gmra.mrb[10].mxu0 %vm48_vm3, %v4367_v30 }
 0x16d   :  { %v1949_v33 = vpop.f32.mrb[0].mxu1 }
 0x16e   :  { %v1950_v5 = vpop.f32.mrb[1].mxu1 }
 0x16f   :  { %v1951_v22 = vadd.f32 %v1950_v5, %v1949_v33 }
 0x176   :  { %v1914_v53 = vpop.f32.mrb[0].mxu0 }
 0x177   :  { %v1915_v46 = vpop.f32.mrb[1].mxu0 }
 0x178   :  { %v1916_v31 = vadd.f32 %v1915_v46, %v1914_v53 }
 0x17a   :  { %v464_v42 = vadd.f32 %v1951_v22, %v1916_v31 }
 0x18d   :  { %v2019_v39 = vpop.f32.mrb[2].mxu1 }
 0x18e   :  { %v2020_v38 = vpop.f32.mrb[3].mxu1 }
 0x18f   :  { %v2021_v29 = vadd.f32 %v2020_v38, %v2019_v39 }
 0x197   :  { %v1984_v7 = vpop.f32.mrb[2].mxu0 }
 0x198   :  { %v1985_v37 = vpop.f32.mrb[3].mxu0 }
 0x199   :  { %v1986_v61 = vadd.f32 %v1985_v37, %v1984_v7 }
 0x19b   :  { %v602_v2 = vadd.f32 %v1986_v61, %v464_v42 }
 0x19d   :  { %v710_v45 = vadd.f32 %v2021_v29, %v602_v2 }
 0x1ad   :  { %v2089_v32 = vpop.f32.mrb[4].mxu1 }
 0x1ae   :  { %v2090_v23 = vpop.f32.mrb[5].mxu1 }
 0x1af   :  { %v2091_v49 = vadd.f32 %v2090_v23, %v2089_v32 }
 0x1b7   :  { %v2054_v48 = vpop.f32.mrb[4].mxu0 }
 0x1b8   :  { %v2055_v30 = vpop.f32.mrb[5].mxu0 }
 0x1b9   :  { %v2056_v43 = vadd.f32 %v2055_v30, %v2054_v48 }
 0x1bb   :  { %v878_v14 = vadd.f32 %v2056_v43, %v710_v45 }
 0x1bd   :  { %v982_v18 = vadd.f32 %v2091_v49, %v878_v14 }
 0x1cd   :  { %v2159_v34 = vpop.f32.mrb[6].mxu1 }
 0x1ce   :  { %v2160_v44 = vpop.f32.mrb[7].mxu1 }
 0x1cf   :  { %v2161_v35 = vadd.f32 %v2160_v44, %v2159_v34 }
 0x1d7   :  { %v2124_v26 = vpop.f32.mrb[6].mxu0 }
 0x1d8   :  { %v2125_v36 = vpop.f32.mrb[7].mxu0 }
 0x1d9   :  { %v2126_v50 = vadd.f32 %v2125_v36, %v2124_v26 }
 0x1db   :  { %v1094_v58 = vadd.f32 %v2126_v50, %v982_v18 }
 0x1dd   :  { %v1326_v3 = vadd.f32 %v2161_v35, %v1094_v58 }
 0x1ed   :  { %v2229_v63 = vpop.f32.mrb[8].mxu1 }
 0x1ee   :  { %v2230_v25 = vpop.f32.mrb[9].mxu1 }
 0x1ef   :  { %v2231_v11 = vadd.f32 %v2230_v25, %v2229_v63 }
 0x1f7   :  { %v2194_v9 = vpop.f32.mrb[8].mxu0 }
 0x1f8   :  { %v2195_v51 = vpop.f32.mrb[9].mxu0 }
 0x1f9   :  { %v2196_v4 = vadd.f32 %v2195_v51, %v2194_v9 }
 0x1fb   :  { %v1464_v17 = vadd.f32 %v2196_v4, %v1326_v3 }
 0x1fd   :  { %v1572_v16 = vadd.f32 %v2231_v11, %v1464_v17 }
 0x20d   :  { %v2299_v20 = vpop.f32.mrb[10].mxu1 }
 0x20e   :  { %v2300_v28 = vpop.f32.mrb[11].mxu1 }
 0x20f   :  { %v2301_v12 = vadd.f32 %v2300_v28, %v2299_v20 }
 0x217   :  { %v2264_v56 = vpop.f32.mrb[10].mxu0 }
 0x218   :  { %v2265_v21 = vpop.f32.mrb[11].mxu0 }
 0x219   :  { %v2266_v13 = vadd.f32 %v2265_v21, %v2264_v56 }
 0x21b   :  { %v1740_v59 = vadd.f32 %v2266_v13, %v1572_v16 }
 0x21d   :  { %v1844_v54 = vadd.f32 %v2301_v12, %v1740_v59 }
 0x21f   :  { %1847 = vst [vmem:[#allocation5] sm:$0xff] %v1844_v54 }
 0x220   :  { %2728 = shalt.err (!%p2725_p12)
}
 0x221   :  { %s2729_s6 = scalar_lea.hbm %s4190_s2, 128 }
 0x222   :  { %p2730_p13 = scmp.ne.s32.totalorder %s4190_s2, %s2729_s6  ;;  %p2733_p0 = scmp.lt.u32.totalorder %s2729_s6, %s4190_s2 }
 0x224   :  { %p2735_p1 = pnand %p2733_p0, %p2730_p13 }
 0x226   :  { %2738 = shalt.err (!%p2735_p1)
}
 0x227   :  { %1857 = dma.vmem_to_hbm [thread:$0]  %s1855_s30, 128, %s4190_s2, [#allocation4]  }
 0x228   :  { %2741 = dma.done.wait [#allocation4], 128  }
 0x229   :  { %2742 = vsyncadd [#allocation4], 4294967168 }
 0x22a   :  { %1861 = vsyncpa [#allocation3], 1 }
 0x22b   :  { %1862 = vsyncpa [#allocation4], 1 }

</bundles_post_ra>
